<compile_context>
chip_gen: v5e
topology: v5e:2x2
jax: 0.10.0
libtpu: 0.0.40
codegen_flags: <defaults>
</compile_context>

<pallas_src>
import functools

import jax
import jax.numpy as jnp
from jax.experimental import pallas as pl
from jax.experimental.pallas import tpu as pltpu


def _round_up(x, m):
    return (x + m - 1) // m * m


def _choose_t_chunk(T, cap=32):
    """Largest divisor of T that is <= cap (static unroll length per grid step)."""
    for c in range(min(T, cap), 0, -1):
        if T % c == 0:
            return c
    return 1


# ----------------------------------------------------------------------------
# Kernel 1: bulk GEMM with folded bias:  out = x @ w + b
# Used for the layer-0 input projection over all timesteps at once.
# ----------------------------------------------------------------------------
def _matmul_bias_kernel(x_ref, w_ref, b_ref, o_ref):
    o_ref[...] = (
        jnp.dot(x_ref[...], w_ref[...], preferred_element_type=jnp.float32)
        + b_ref[...]
    ).astype(o_ref.dtype)


def matmul_bias(x, w, b, block_m=512):
    """x: (M, K), w: (K, N), b: (1, N) -> (M, N) float32."""
    M, K = x.shape
    N = w.shape[1]
    bm = M if M <= block_m else block_m
    return pl.pallas_call(
        _matmul_bias_kernel,
        out_shape=jax.ShapeDtypeStruct((M, N), jnp.float32),
        grid=(pl.cdiv(M, bm),),
        in_specs=[
            pl.BlockSpec((bm, K), lambda i: (i, 0)),
            pl.BlockSpec((K, N), lambda i: (0, 0)),
            pl.BlockSpec((1, N), lambda i: (0, 0)),
        ],
        out_specs=pl.BlockSpec((bm, N), lambda i: (i, 0)),
        compiler_params=pltpu.CompilerParams(
            dimension_semantics=("parallel",)),
    )(x, w, b)


# ----------------------------------------------------------------------------
# Kernel 2: fused 2-layer LSTM recurrence + linear head.
#   xp_ref   : (T_chunk*B_pad, 4H)  precomputed layer-0 input projection (+bias)
#   whh0_ref : (H, 4H)              layer-0 recurrent weight (transposed)
#   w1_ref   : (2H, 4H)             [W_ih1^T ; W_hh1^T] concatenated
#   b1_ref   : (1, 4H)              layer-1 combined bias
#   wlin_ref : (H, O_pad)           head weight (transposed, lane padded)
#   blin_ref : (1, O_pad)           head bias   (lane padded)
#   out_ref  : (T_chunk*B_pad, O_pad) logits slab (time-major rows)
#   scratch  : h0, c0, h1, c1 (B_pad, H) persistent state; h1_buf chunk buffer.
# ----------------------------------------------------------------------------
def _fused_lstm_head_kernel(xp_ref, whh0_ref, w1_ref, b1_ref, wlin_ref,
                            blin_ref, out_ref, h0, c0, h1, c1, h1_buf):
    @pl.when(pl.program_id(0) == 0)
    def _():
        h0[...] = jnp.zeros_like(h0)
        c0[...] = jnp.zeros_like(c0)
        h1[...] = jnp.zeros_like(h1)
        c1[...] = jnp.zeros_like(c1)

    B = h0.shape[0]
    H = h0.shape[1]
    t_chunk = xp_ref.shape[0] // B

    # Hoist invariant weight loads out of the unrolled time loop.
    whh0 = whh0_ref[...]
    w1 = w1_ref[...]
    b1 = b1_ref[...]

    def cell(gates, c_prev):
        # Full-vreg transcendentals (one sigmoid + one tanh over all 4H lanes),
        # then slice the activated gates.  PyTorch gate order: i | f | g | o.
        sg = jax.nn.sigmoid(gates)
        th = jnp.tanh(gates)
        i = sg[:, 0 * H:1 * H]
        f = sg[:, 1 * H:2 * H]
        g = th[:, 2 * H:3 * H]
        o = sg[:, 3 * H:4 * H]
        c_new = f * c_prev + i * g
        h_new = o * jnp.tanh(c_new)
        return h_new, c_new

    # Static unroll over the time chunk (t_chunk is small by construction).
    for tt in range(t_chunk):
        r0 = tt * B

        # Layer 0: input projection precomputed; only the recurrent matmul here.
        g0 = xp_ref[r0:r0 + B, :] + jnp.dot(
            h0[...], whh0, preferred_element_type=jnp.float32)
        h0n, c0n = cell(g0, c0[...])
        h0[...] = h0n
        c0[...] = c0n

        # Layer 1: single fused matmul on concat([h0_new, h1_prev]).
        z = jnp.concatenate([h0n, h1[...]], axis=-1)          # (B, 2H)
        g1 = jnp.dot(z, w1, preferred_element_type=jnp.float32) + b1
        h1n, c1n = cell(g1, c1[...])
        h1[...] = h1n
        c1[...] = c1n

        h1_buf[r0:r0 + B, :] = h1n

    # Fused linear head: one well-shaped GEMM per chunk, lane-dense output.
    logits = jnp.dot(h1_buf[...], wlin_ref[...],
                     preferred_element_type=jnp.float32) + blin_ref[...]
    out_ref[...] = logits.astype(out_ref.dtype)


# ----------------------------------------------------------------------------
# Full TrumpLSTM forward
# ----------------------------------------------------------------------------
def trump_lstm_forward(x_btd, params):
    """x_btd: (B, T, input_size) float32 -> logits (B*T, output_size)."""
    B, T, D = x_btd.shape
    w_ih0, w_hh0, b_ih0, b_hh0 = params["l0"]
    w_ih1, w_hh1, b_ih1, b_hh1 = params["l1"]
    w_lin, b_lin = params["lin_w"], params["lin_b"]
    H = w_hh0.shape[1]
    O = w_lin.shape[0]

    B_pad = _round_up(B, 8)       # sublane-align the batch axis
    O_pad = _round_up(O, 128)     # lane-dense logits stores

    if B_pad != B:
        x_btd = jnp.pad(x_btd, ((0, B_pad - B), (0, 0), (0, 0)))

    # Time-major flat rows (row index = t*B_pad + b) for the bulk projection.
    x_flat = jnp.transpose(x_btd, (1, 0, 2)).reshape(T * B_pad, D)

    # Kernel 1: hoisted layer-0 input projection with folded bias.
    wih0_t = jnp.transpose(w_ih0)                      # (D, 4H)
    b0 = (b_ih0 + b_hh0).reshape(1, 4 * H)
    xproj = matmul_bias(x_flat, wih0_t, b0)            # (T*B_pad, 4H)

    # Fused-kernel weights.
    whh0_t = jnp.transpose(w_hh0)                                      # (H, 4H)
    w1cat_t = jnp.concatenate(
        [jnp.transpose(w_ih1), jnp.transpose(w_hh1)], axis=0)          # (2H, 4H)
    b1 = (b_ih1 + b_hh1).reshape(1, 4 * H)
    wlin_t = jnp.zeros((H, O_pad), jnp.float32).at[:, :O].set(jnp.transpose(w_lin))
    blin = jnp.zeros((1, O_pad), jnp.float32).at[:, :O].set(b_lin.reshape(1, O))

    t_chunk = _choose_t_chunk(T)
    n_chunks = T // t_chunk
    rows = t_chunk * B_pad

    logits_pad = pl.pallas_call(
        _fused_lstm_head_kernel,
        out_shape=jax.ShapeDtypeStruct((T * B_pad, O_pad), jnp.float32),
        grid=(n_chunks,),
        in_specs=[
            pl.BlockSpec((rows, 4 * H), lambda c: (c, 0)),      # xproj chunk
            pl.BlockSpec((H, 4 * H), lambda c: (0, 0)),         # W_hh0^T
            pl.BlockSpec((2 * H, 4 * H), lambda c: (0, 0)),     # [W_ih1;W_hh1]^T
            pl.BlockSpec((1, 4 * H), lambda c: (0, 0)),         # b1
            pl.BlockSpec((H, O_pad), lambda c: (0, 0)),         # W_lin^T (padded)
            pl.BlockSpec((1, O_pad), lambda c: (0, 0)),         # b_lin  (padded)
        ],
        out_specs=pl.BlockSpec((rows, O_pad), lambda c: (c, 0)),
        scratch_shapes=[
            pltpu.VMEM((B_pad, H), jnp.float32),     # h0
            pltpu.VMEM((B_pad, H), jnp.float32),     # c0
            pltpu.VMEM((B_pad, H), jnp.float32),     # h1
            pltpu.VMEM((B_pad, H), jnp.float32),     # c1
            pltpu.VMEM((rows, H), jnp.float32),      # h1 chunk buffer
        ],
        compiler_params=pltpu.CompilerParams(
            dimension_semantics=("arbitrary",)),     # sequential recurrence
    )(xproj, whh0_t, w1cat_t, b1, wlin_t, blin)

    # Back to PyTorch's reshape(-1, H) row order: rows ordered (b, t).
    logits = logits_pad.reshape(T, B_pad, O_pad)[:, :B, :O]
    logits = jnp.transpose(logits, (1, 0, 2)).reshape(B * T, O)
    return logits


# ----------------------------------------------------------------------------
# Pure-JAX reference (matches PyTorch nn.LSTM + nn.Linear semantics)
# ----------------------------------------------------------------------------
def _lstm_layer_ref(x_tbd, w_ih, w_hh, b_ih, b_hh):
    T, B, D = x_tbd.shape
    H = w_hh.shape[1]

    def step(carry, x_t):
        h, c = carry
        gates = x_t @ w_ih.T + h @ w_hh.T + b_ih + b_hh
        i, f, g, o = jnp.split(gates, 4, axis=-1)
        i = jax.nn.sigmoid(i)
        f = jax.nn.sigmoid(f)
        g = jnp.tanh(g)
        o = jax.nn.sigmoid(o)
        c = f * c + i * g
        h = o * jnp.tanh(c)
        return (h, c), h

    init = (jnp.zeros((B, H), jnp.float32), jnp.zeros((B, H), jnp.float32))
    _, hs = jax.lax.scan(step, init, x_tbd)
    return hs


def trump_lstm_ref(x_btd, params):
    H = params["l0"][1].shape[1]
    x_tbd = jnp.transpose(x_btd, (1, 0, 2))
    h = _lstm_layer_ref(x_tbd, *params["l0"])
    h = _lstm_layer_ref(h, *params["l1"])
    h_flat = jnp.transpose(h, (1, 0, 2)).reshape(-1, H)
    return h_flat @ params["lin_w"].T + params["lin_b"]


# ----------------------------------------------------------------------------
# Deterministic parameter init (PyTorch-style U(-1/sqrt(H), 1/sqrt(H)))
# ----------------------------------------------------------------------------
def init_params(key, input_size, hidden_size, output_size):
    H = hidden_size
    k = 1.0 / jnp.sqrt(jnp.float32(H))
    keys = jax.random.split(key, 10)

    def u(kk, shape):
        return jax.random.uniform(kk, shape, jnp.float32, -k, k)

    return {
        "l0": (
            u(keys[0], (4 * H, input_size)),   # weight_ih_l0
            u(keys[1], (4 * H, H)),            # weight_hh_l0
            u(keys[2], (4 * H,)),              # bias_ih_l0
            u(keys[3], (4 * H,)),              # bias_hh_l0
        ),
        "l1": (
            u(keys[4], (4 * H, H)),            # weight_ih_l1
            u(keys[5], (4 * H, H)),            # weight_hh_l1
            u(keys[6], (4 * H,)),              # bias_ih_l1
            u(keys[7], (4 * H,)),              # bias_hh_l1
        ),
        "lin_w": u(keys[8], (output_size, H)),  # nn.Linear weight
        "lin_b": u(keys[9], (output_size,)),    # nn.Linear bias
    }


if __name__ == "__main__":
    # Small, module-consistent shapes: vocab (= input_size = output_size) = 16,
    # hidden_size = 32 (so 4H = 128 lanes), n_layers = 2, batch = 2, seq = 8.
    INPUT_SIZE = 16
    HIDDEN_SIZE = 32
    OUTPUT_SIZE = 16
    BATCH = 2
    SEQ = 8

    root = jax.random.PRNGKey(0)
    kx, kp = jax.random.split(root)

    # One-hot style float inputs (what the PyTorch model consumes).
    ids = jax.random.randint(kx, (BATCH, SEQ), 0, INPUT_SIZE)
    x = jax.nn.one_hot(ids, INPUT_SIZE, dtype=jnp.float32)   # (B, T, input_size)

    params = init_params(kp, INPUT_SIZE, HIDDEN_SIZE, OUTPUT_SIZE)

    fwd = jax.jit(trump_lstm_forward)
    out = fwd(x, params)
    out = jax.block_until_ready(out)

    ref = trump_lstm_ref(x, params)
    assert out.shape == (BATCH * SEQ, OUTPUT_SIZE), out.shape
    max_err = float(jnp.max(jnp.abs(out - ref)))
    assert jnp.allclose(out, ref, atol=1e-4, rtol=1e-4), max_err

    # TODO(synk): predict()/sample()/encoder helpers are host-side utilities
    # (numpy / sklearn / tokenizer) and are intentionally not ported to Pallas.
    print("KERNEL_OK")
</pallas_src>

<mosaic_0001>
module attributes {stable_mosaic.version = 11 : i64} {
  func.func @_matmul_bias_kernel(%arg0: i32, %arg1: memref<64x16xf32, #tpu.memory_space<vmem>>, %arg2: memref<16x128xf32, #tpu.memory_space<vmem>>, %arg3: memref<1x128xf32, #tpu.memory_space<vmem>>, %arg4: memref<64x128xf32, #tpu.memory_space<vmem>>) attributes {dimension_semantics = [#tpu.dimension_semantics<parallel>], iteration_bounds = array<i64: 1>, scalar_prefetch = 0 : i64, scratch_operands = 0 : i64, tpu.core_type = #tpu.core_type<tc>, window_params = [{transform_indices = @transform_0, window_bounds = array<i64: 64, 16>}, {pipeline_mode = #tpu.pipeline_mode<synchronous>, transform_indices = @transform_1, window_bounds = array<i64: 16, 128>}, {pipeline_mode = #tpu.pipeline_mode<synchronous>, transform_indices = @transform_2, window_bounds = array<i64: 1, 128>}, {transform_indices = @transform_3, window_bounds = array<i64: 64, 128>}]} {
    %c0 = arith.constant 0 : index
    %c0_0 = arith.constant 0 : index
    %0 = vector.load %arg1[%c0, %c0_0] : memref<64x16xf32, #tpu.memory_space<vmem>>, vector<64x16xf32>
    %c0_1 = arith.constant 0 : index
    %c0_2 = arith.constant 0 : index
    %1 = vector.load %arg2[%c0_1, %c0_2] : memref<16x128xf32, #tpu.memory_space<vmem>>, vector<16x128xf32>
    %cst = arith.constant dense<0.000000e+00> : vector<64x128xf32>
    %2 = tpu.matmul %0, %1, %cst {dimension_numbers = #tpu.dot_dimension_numbers<[1], [0], [0], [1], [0, 0, 1, 1], [], []>} : vector<64x16xf32>, vector<16x128xf32>, vector<64x128xf32> -> vector<64x128xf32>
    %c0_3 = arith.constant 0 : index
    %c0_4 = arith.constant 0 : index
    %3 = vector.load %arg3[%c0_3, %c0_4] : memref<1x128xf32, #tpu.memory_space<vmem>>, vector<1x128xf32>
    %4 = vector.broadcast %3 : vector<1x128xf32> to vector<64x128xf32>
    %5 = arith.addf %2, %4 : vector<64x128xf32>
    %c0_5 = arith.constant 0 : index
    %c0_6 = arith.constant 0 : index
    %6 = vector.load %arg4[%c0_5, %c0_6] : memref<64x128xf32, #tpu.memory_space<vmem>>, vector<64x128xf32>
    tpu.vector_store %arg4[%c0_5, %c0_6], %5 {strides = array<i32>} : memref<64x128xf32, #tpu.memory_space<vmem>>, vector<64x128xf32>,
    return
  }
  func.func @transform_0(%arg0: i32) -> (i32, i32) {
    %c0_i32 = arith.constant 0 : i32
    %c0_i32_0 = arith.constant 0 : i32
    return %arg0, %c0_i32 : i32, i32
  }
  func.func @transform_1(%arg0: i32) -> (i32, i32) {
    %c0_i32 = arith.constant 0 : i32
    %c0_i32_0 = arith.constant 0 : i32
    %c0_i32_1 = arith.constant 0 : i32
    return %c0_i32, %c0_i32_0 : i32, i32
  }
  func.func @transform_2(%arg0: i32) -> (i32, i32) {
    %c0_i32 = arith.constant 0 : i32
    %c0_i32_0 = arith.constant 0 : i32
    %c0_i32_1 = arith.constant 0 : i32
    return %c0_i32, %c0_i32_0 : i32, i32
  }
  func.func @transform_3(%arg0: i32) -> (i32, i32) {
    %c0_i32 = arith.constant 0 : i32
    %c0_i32_0 = arith.constant 0 : i32
    return %arg0, %c0_i32 : i32, i32
  }
}

module attributes {stable_mosaic.version = 11 : i64} {
  func.func @_fused_lstm_head_kernel(%arg0: i32, %arg1: memref<64x128xf32, #tpu.memory_space<vmem>>, %arg2: memref<32x128xf32, #tpu.memory_space<vmem>>, %arg3: memref<64x128xf32, #tpu.memory_space<vmem>>, %arg4: memref<1x128xf32, #tpu.memory_space<vmem>>, %arg5: memref<32x128xf32, #tpu.memory_space<vmem>>, %arg6: memref<1x128xf32, #tpu.memory_space<vmem>>, %arg7: memref<64x128xf32, #tpu.memory_space<vmem>>, %arg8: memref<8x32xf32, #tpu.memory_space<vmem>>, %arg9: memref<8x32xf32, #tpu.memory_space<vmem>>, %arg10: memref<8x32xf32, #tpu.memory_space<vmem>>, %arg11: memref<8x32xf32, #tpu.memory_space<vmem>>, %arg12: memref<64x32xf32, #tpu.memory_space<vmem>>) attributes {dimension_semantics = [#tpu.dimension_semantics<arbitrary>], iteration_bounds = array<i64: 1>, scalar_prefetch = 0 : i64, scratch_operands = 5 : i64, tpu.core_type = #tpu.core_type<tc>, window_params = [{transform_indices = @transform_0, window_bounds = array<i64: 64, 128>}, {pipeline_mode = #tpu.pipeline_mode<synchronous>, transform_indices = @transform_1, window_bounds = array<i64: 32, 128>}, {pipeline_mode = #tpu.pipeline_mode<synchronous>, transform_indices = @transform_2, window_bounds = array<i64: 64, 128>}, {pipeline_mode = #tpu.pipeline_mode<synchronous>, transform_indices = @transform_3, window_bounds = array<i64: 1, 128>}, {pipeline_mode = #tpu.pipeline_mode<synchronous>, transform_indices = @transform_4, window_bounds = array<i64: 32, 128>}, {pipeline_mode = #tpu.pipeline_mode<synchronous>, transform_indices = @transform_5, window_bounds = array<i64: 1, 128>}, {transform_indices = @transform_6, window_bounds = array<i64: 64, 128>}]} {
    %c0_i32 = arith.constant 0 : i32
    %0 = arith.cmpi eq, %arg0, %c0_i32 : i32
    %1 = arith.extui %0 : i1 to i32
    %c0_i32_0 = arith.constant 0 : i32
    %2 = arith.cmpi ne, %1, %c0_i32_0 : i32
    scf.if %2 {
      %cst_199 = arith.constant 0.000000e+00 : f32
      %381 = vector.broadcast %cst_199 : f32 to vector<8x32xf32>
      %c0_200 = arith.constant 0 : index
      %c0_201 = arith.constant 0 : index
      %382 = vector.load %arg8[%c0_200, %c0_201] : memref<8x32xf32, #tpu.memory_space<vmem>>, vector<8x32xf32>
      tpu.vector_store %arg8[%c0_200, %c0_201], %381 {strides = array<i32>} : memref<8x32xf32, #tpu.memory_space<vmem>>, vector<8x32xf32>,
      %cst_202 = arith.constant 0.000000e+00 : f32
      %383 = vector.broadcast %cst_202 : f32 to vector<8x32xf32>
      %c0_203 = arith.constant 0 : index
      %c0_204 = arith.constant 0 : index
      %384 = vector.load %arg9[%c0_203, %c0_204] : memref<8x32xf32, #tpu.memory_space<vmem>>, vector<8x32xf32>
      tpu.vector_store %arg9[%c0_203, %c0_204], %383 {strides = array<i32>} : memref<8x32xf32, #tpu.memory_space<vmem>>, vector<8x32xf32>,
      %cst_205 = arith.constant 0.000000e+00 : f32
      %385 = vector.broadcast %cst_205 : f32 to vector<8x32xf32>
      %c0_206 = arith.constant 0 : index
      %c0_207 = arith.constant 0 : index
      %386 = vector.load %arg10[%c0_206, %c0_207] : memref<8x32xf32, #tpu.memory_space<vmem>>, vector<8x32xf32>
      tpu.vector_store %arg10[%c0_206, %c0_207], %385 {strides = array<i32>} : memref<8x32xf32, #tpu.memory_space<vmem>>, vector<8x32xf32>,
      %cst_208 = arith.constant 0.000000e+00 : f32
      %387 = vector.broadcast %cst_208 : f32 to vector<8x32xf32>
      %c0_209 = arith.constant 0 : index
      %c0_210 = arith.constant 0 : index
      %388 = vector.load %arg11[%c0_209, %c0_210] : memref<8x32xf32, #tpu.memory_space<vmem>>, vector<8x32xf32>
      tpu.vector_store %arg11[%c0_209, %c0_210], %387 {strides = array<i32>} : memref<8x32xf32, #tpu.memory_space<vmem>>, vector<8x32xf32>,
    } else {
    }
    %c0 = arith.constant 0 : index
    %c0_1 = arith.constant 0 : index
    %3 = vector.load %arg2[%c0, %c0_1] : memref<32x128xf32, #tpu.memory_space<vmem>>, vector<32x128xf32>
    %c0_2 = arith.constant 0 : index
    %c0_3 = arith.constant 0 : index
    %4 = vector.load %arg3[%c0_2, %c0_3] : memref<64x128xf32, #tpu.memory_space<vmem>>, vector<64x128xf32>
    %c0_4 = arith.constant 0 : index
    %c0_5 = arith.constant 0 : index
    %5 = vector.load %arg4[%c0_4, %c0_5] : memref<1x128xf32, #tpu.memory_space<vmem>>, vector<1x128xf32>
    %c0_6 = arith.constant 0 : index
    %c0_7 = arith.constant 0 : index
    %6 = vector.load %arg1[%c0_6, %c0_7] : memref<64x128xf32, #tpu.memory_space<vmem>>, vector<8x128xf32>
    %c0_8 = arith.constant 0 : index
    %c0_9 = arith.constant 0 : index
    %7 = vector.load %arg8[%c0_8, %c0_9] : memref<8x32xf32, #tpu.memory_space<vmem>>, vector<8x32xf32>
    %cst = arith.constant dense<0.000000e+00> : vector<8x128xf32>
    %8 = tpu.matmul %7, %3, %cst {dimension_numbers = #tpu.dot_dimension_numbers<[1], [0], [0], [1], [0, 0, 1, 1], [], []>} : vector<8x32xf32>, vector<32x128xf32>, vector<8x128xf32> -> vector<8x128xf32>
    %9 = arith.addf %6, %8 : vector<8x128xf32>
    %c0_10 = arith.constant 0 : index
    %c0_11 = arith.constant 0 : index
    %10 = vector.load %arg9[%c0_10, %c0_11] : memref<8x32xf32, #tpu.memory_space<vmem>>, vector<8x32xf32>
    %11 = arith.negf %9 : vector<8x128xf32>
    %12 = math.exp %11 : vector<8x128xf32>
    %cst_12 = arith.constant 1.000000e+00 : f32
    %13 = vector.broadcast %cst_12 : f32 to vector<8x128xf32>
    %14 = arith.addf %13, %12 : vector<8x128xf32>
    %15 = arith.divf %13, %14 : vector<8x128xf32>
    %16 = math.tanh %9 : vector<8x128xf32>
    %17 = vector.extract_strided_slice %15 {offsets = [0, 0], sizes = [8, 32], strides = [1, 1]} : vector<8x128xf32> to vector<8x32xf32>
    %18 = vector.extract_strided_slice %15 {offsets = [0, 32], sizes = [8, 32], strides = [1, 1]} : vector<8x128xf32> to vector<8x32xf32>
    %19 = vector.extract_strided_slice %16 {offsets = [0, 64], sizes = [8, 32], strides = [1, 1]} : vector<8x128xf32> to vector<8x32xf32>
    %20 = vector.extract_strided_slice %15 {offsets = [0, 96], sizes = [8, 32], strides = [1, 1]} : vector<8x128xf32> to vector<8x32xf32>
    %21 = arith.mulf %18, %10 : vector<8x32xf32>
    %22 = arith.mulf %17, %19 : vector<8x32xf32>
    %23 = arith.addf %21, %22 : vector<8x32xf32>
    %24 = math.tanh %23 : vector<8x32xf32>
    %25 = arith.mulf %20, %24 : vector<8x32xf32>
    %c0_13 = arith.constant 0 : index
    %c0_14 = arith.constant 0 : index
    %26 = vector.load %arg8[%c0_13, %c0_14] : memref<8x32xf32, #tpu.memory_space<vmem>>, vector<8x32xf32>
    tpu.vector_store %arg8[%c0_13, %c0_14], %25 {strides = array<i32>} : memref<8x32xf32, #tpu.memory_space<vmem>>, vector<8x32xf32>,
    %c0_15 = arith.constant 0 : index
    %c0_16 = arith.constant 0 : index
    %27 = vector.load %arg9[%c0_15, %c0_16] : memref<8x32xf32, #tpu.memory_space<vmem>>, vector<8x32xf32>
    tpu.vector_store %arg9[%c0_15, %c0_16], %23 {strides = array<i32>} : memref<8x32xf32, #tpu.memory_space<vmem>>, vector<8x32xf32>,
    %c0_17 = arith.constant 0 : index
    %c0_18 = arith.constant 0 : index
    %28 = vector.load %arg10[%c0_17, %c0_18] : memref<8x32xf32, #tpu.memory_space<vmem>>, vector<8x32xf32>
    %29 = tpu.concatenate %25, %28 in 1 : vector<8x32xf32>, vector<8x32xf32> -> vector<8x64xf32>
    %cst_19 = arith.constant dense<0.000000e+00> : vector<8x128xf32>
    %30 = tpu.matmul %29, %4, %cst_19 {dimension_numbers = #tpu.dot_dimension_numbers<[1], [0], [0], [1], [0, 0, 1, 1], [], []>} : vector<8x64xf32>, vector<64x128xf32>, vector<8x128xf32> -> vector<8x128xf32>
    %31 = vector.broadcast %5 : vector<1x128xf32> to vector<8x128xf32>
    %32 = arith.addf %30, %31 : vector<8x128xf32>
    %c0_20 = arith.constant 0 : index
    %c0_21 = arith.constant 0 : index
    %33 = vector.load %arg11[%c0_20, %c0_21] : memref<8x32xf32, #tpu.memory_space<vmem>>, vector<8x32xf32>
    %34 = arith.negf %32 : vector<8x128xf32>
    %35 = math.exp %34 : vector<8x128xf32>
    %cst_22 = arith.constant 1.000000e+00 : f32
    %36 = vector.broadcast %cst_22 : f32 to vector<8x128xf32>
    %37 = arith.addf %36, %35 : vector<8x128xf32>
    %38 = arith.divf %36, %37 : vector<8x128xf32>
    %39 = math.tanh %32 : vector<8x128xf32>
    %40 = vector.extract_strided_slice %38 {offsets = [0, 0], sizes = [8, 32], strides = [1, 1]} : vector<8x128xf32> to vector<8x32xf32>
    %41 = vector.extract_strided_slice %38 {offsets = [0, 32], sizes = [8, 32], strides = [1, 1]} : vector<8x128xf32> to vector<8x32xf32>
    %42 = vector.extract_strided_slice %39 {offsets = [0, 64], sizes = [8, 32], strides = [1, 1]} : vector<8x128xf32> to vector<8x32xf32>
    %43 = vector.extract_strided_slice %38 {offsets = [0, 96], sizes = [8, 32], strides = [1, 1]} : vector<8x128xf32> to vector<8x32xf32>
    %44 = arith.mulf %41, %33 : vector<8x32xf32>
    %45 = arith.mulf %40, %42 : vector<8x32xf32>
    %46 = arith.addf %44, %45 : vector<8x32xf32>
    %47 = math.tanh %46 : vector<8x32xf32>
    %48 = arith.mulf %43, %47 : vector<8x32xf32>
    %c0_23 = arith.constant 0 : index
    %c0_24 = arith.constant 0 : index
    %49 = vector.load %arg10[%c0_23, %c0_24] : memref<8x32xf32, #tpu.memory_space<vmem>>, vector<8x32xf32>
    tpu.vector_store %arg10[%c0_23, %c0_24], %48 {strides = array<i32>} : memref<8x32xf32, #tpu.memory_space<vmem>>, vector<8x32xf32>,
    %c0_25 = arith.constant 0 : index
    %c0_26 = arith.constant 0 : index
    %50 = vector.load %arg11[%c0_25, %c0_26] : memref<8x32xf32, #tpu.memory_space<vmem>>, vector<8x32xf32>
    tpu.vector_store %arg11[%c0_25, %c0_26], %46 {strides = array<i32>} : memref<8x32xf32, #tpu.memory_space<vmem>>, vector<8x32xf32>,
    %c0_27 = arith.constant 0 : index
    %c0_28 = arith.constant 0 : index
    %51 = vector.load %arg12[%c0_27, %c0_28] : memref<64x32xf32, #tpu.memory_space<vmem>>, vector<8x32xf32>
    tpu.vector_store %arg12[%c0_27, %c0_28], %48 {strides = array<i32>} : memref<64x32xf32, #tpu.memory_space<vmem>>, vector<8x32xf32>,
    %c8 = arith.constant 8 : index
    %c0_29 = arith.constant 0 : index
    %52 = vector.load %arg1[%c8, %c0_29] : memref<64x128xf32, #tpu.memory_space<vmem>>, vector<8x128xf32>
    %c0_30 = arith.constant 0 : index
    %c0_31 = arith.constant 0 : index
    %53 = vector.load %arg8[%c0_30, %c0_31] : memref<8x32xf32, #tpu.memory_space<vmem>>, vector<8x32xf32>
    %cst_32 = arith.constant dense<0.000000e+00> : vector<8x128xf32>
    %54 = tpu.matmul %53, %3, %cst_32 {dimension_numbers = #tpu.dot_dimension_numbers<[1], [0], [0], [1], [0, 0, 1, 1], [], []>} : vector<8x32xf32>, vector<32x128xf32>, vector<8x128xf32> -> vector<8x128xf32>
    %55 = arith.addf %52, %54 : vector<8x128xf32>
    %c0_33 = arith.constant 0 : index
    %c0_34 = arith.constant 0 : index
    %56 = vector.load %arg9[%c0_33, %c0_34] : memref<8x32xf32, #tpu.memory_space<vmem>>, vector<8x32xf32>
    %57 = arith.negf %55 : vector<8x128xf32>
    %58 = math.exp %57 : vector<8x128xf32>
    %cst_35 = arith.constant 1.000000e+00 : f32
    %59 = vector.broadcast %cst_35 : f32 to vector<8x128xf32>
    %60 = arith.addf %59, %58 : vector<8x128xf32>
    %61 = arith.divf %59, %60 : vector<8x128xf32>
    %62 = math.tanh %55 : vector<8x128xf32>
    %63 = vector.extract_strided_slice %61 {offsets = [0, 0], sizes = [8, 32], strides = [1, 1]} : vector<8x128xf32> to vector<8x32xf32>
    %64 = vector.extract_strided_slice %61 {offsets = [0, 32], sizes = [8, 32], strides = [1, 1]} : vector<8x128xf32> to vector<8x32xf32>
    %65 = vector.extract_strided_slice %62 {offsets = [0, 64], sizes = [8, 32], strides = [1, 1]} : vector<8x128xf32> to vector<8x32xf32>
    %66 = vector.extract_strided_slice %61 {offsets = [0, 96], sizes = [8, 32], strides = [1, 1]} : vector<8x128xf32> to vector<8x32xf32>
    %67 = arith.mulf %64, %56 : vector<8x32xf32>
    %68 = arith.mulf %63, %65 : vector<8x32xf32>
    %69 = arith.addf %67, %68 : vector<8x32xf32>
    %70 = math.tanh %69 : vector<8x32xf32>
    %71 = arith.mulf %66, %70 : vector<8x32xf32>
    %c0_36 = arith.constant 0 : index
    %c0_37 = arith.constant 0 : index
    %72 = vector.load %arg8[%c0_36, %c0_37] : memref<8x32xf32, #tpu.memory_space<vmem>>, vector<8x32xf32>
    tpu.vector_store %arg8[%c0_36, %c0_37], %71 {strides = array<i32>} : memref<8x32xf32, #tpu.memory_space<vmem>>, vector<8x32xf32>,
    %c0_38 = arith.constant 0 : index
    %c0_39 = arith.constant 0 : index
    %73 = vector.load %arg9[%c0_38, %c0_39] : memref<8x32xf32, #tpu.memory_space<vmem>>, vector<8x32xf32>
    tpu.vector_store %arg9[%c0_38, %c0_39], %69 {strides = array<i32>} : memref<8x32xf32, #tpu.memory_space<vmem>>, vector<8x32xf32>,
    %c0_40 = arith.constant 0 : index
    %c0_41 = arith.constant 0 : index
    %74 = vector.load %arg10[%c0_40, %c0_41] : memref<8x32xf32, #tpu.memory_space<vmem>>, vector<8x32xf32>
    %75 = tpu.concatenate %71, %74 in 1 : vector<8x32xf32>, vector<8x32xf32> -> vector<8x64xf32>
    %cst_42 = arith.constant dense<0.000000e+00> : vector<8x128xf32>
    %76 = tpu.matmul %75, %4, %cst_42 {dimension_numbers = #tpu.dot_dimension_numbers<[1], [0], [0], [1], [0, 0, 1, 1], [], []>} : vector<8x64xf32>, vector<64x128xf32>, vector<8x128xf32> -> vector<8x128xf32>
    %77 = vector.broadcast %5 : vector<1x128xf32> to vector<8x128xf32>
    %78 = arith.addf %76, %77 : vector<8x128xf32>
    %c0_43 = arith.constant 0 : index
    %c0_44 = arith.constant 0 : index
    %79 = vector.load %arg11[%c0_43, %c0_44] : memref<8x32xf32, #tpu.memory_space<vmem>>, vector<8x32xf32>
    %80 = arith.negf %78 : vector<8x128xf32>
    %81 = math.exp %80 : vector<8x128xf32>
    %cst_45 = arith.constant 1.000000e+00 : f32
    %82 = vector.broadcast %cst_45 : f32 to vector<8x128xf32>
    %83 = arith.addf %82, %81 : vector<8x128xf32>
    %84 = arith.divf %82, %83 : vector<8x128xf32>
    %85 = math.tanh %78 : vector<8x128xf32>
    %86 = vector.extract_strided_slice %84 {offsets = [0, 0], sizes = [8, 32], strides = [1, 1]} : vector<8x128xf32> to vector<8x32xf32>
    %87 = vector.extract_strided_slice %84 {offsets = [0, 32], sizes = [8, 32], strides = [1, 1]} : vector<8x128xf32> to vector<8x32xf32>
    %88 = vector.extract_strided_slice %85 {offsets = [0, 64], sizes = [8, 32], strides = [1, 1]} : vector<8x128xf32> to vector<8x32xf32>
    %89 = vector.extract_strided_slice %84 {offsets = [0, 96], sizes = [8, 32], strides = [1, 1]} : vector<8x128xf32> to vector<8x32xf32>
    %90 = arith.mulf %87, %79 : vector<8x32xf32>
    %91 = arith.mulf %86, %88 : vector<8x32xf32>
    %92 = arith.addf %90, %91 : vector<8x32xf32>
    %93 = math.tanh %92 : vector<8x32xf32>
    %94 = arith.mulf %89, %93 : vector<8x32xf32>
    %c0_46 = arith.constant 0 : index
    %c0_47 = arith.constant 0 : index
    %95 = vector.load %arg10[%c0_46, %c0_47] : memref<8x32xf32, #tpu.memory_space<vmem>>, vector<8x32xf32>
    tpu.vector_store %arg10[%c0_46, %c0_47], %94 {strides = array<i32>} : memref<8x32xf32, #tpu.memory_space<vmem>>, vector<8x32xf32>,
    %c0_48 = arith.constant 0 : index
    %c0_49 = arith.constant 0 : index
    %96 = vector.load %arg11[%c0_48, %c0_49] : memref<8x32xf32, #tpu.memory_space<vmem>>, vector<8x32xf32>
    tpu.vector_store %arg11[%c0_48, %c0_49], %92 {strides = array<i32>} : memref<8x32xf32, #tpu.memory_space<vmem>>, vector<8x32xf32>,
    %c8_50 = arith.constant 8 : index
    %c0_51 = arith.constant 0 : index
    %97 = vector.load %arg12[%c8_50, %c0_51] : memref<64x32xf32, #tpu.memory_space<vmem>>, vector<8x32xf32>
    tpu.vector_store %arg12[%c8_50, %c0_51], %94 {strides = array<i32>} : memref<64x32xf32, #tpu.memory_space<vmem>>, vector<8x32xf32>,
    %c16 = arith.constant 16 : index
    %c0_52 = arith.constant 0 : index
    %98 = vector.load %arg1[%c16, %c0_52] : memref<64x128xf32, #tpu.memory_space<vmem>>, vector<8x128xf32>
    %c0_53 = arith.constant 0 : index
    %c0_54 = arith.constant 0 : index
    %99 = vector.load %arg8[%c0_53, %c0_54] : memref<8x32xf32, #tpu.memory_space<vmem>>, vector<8x32xf32>
    %cst_55 = arith.constant dense<0.000000e+00> : vector<8x128xf32>
    %100 = tpu.matmul %99, %3, %cst_55 {dimension_numbers = #tpu.dot_dimension_numbers<[1], [0], [0], [1], [0, 0, 1, 1], [], []>} : vector<8x32xf32>, vector<32x128xf32>, vector<8x128xf32> -> vector<8x128xf32>
    %101 = arith.addf %98, %100 : vector<8x128xf32>
    %c0_56 = arith.constant 0 : index
    %c0_57 = arith.constant 0 : index
    %102 = vector.load %arg9[%c0_56, %c0_57] : memref<8x32xf32, #tpu.memory_space<vmem>>, vector<8x32xf32>
    %103 = arith.negf %101 : vector<8x128xf32>
    %104 = math.exp %103 : vector<8x128xf32>
    %cst_58 = arith.constant 1.000000e+00 : f32
    %105 = vector.broadcast %cst_58 : f32 to vector<8x128xf32>
    %106 = arith.addf %105, %104 : vector<8x128xf32>
    %107 = arith.divf %105, %106 : vector<8x128xf32>
    %108 = math.tanh %101 : vector<8x128xf32>
    %109 = vector.extract_strided_slice %107 {offsets = [0, 0], sizes = [8, 32], strides = [1, 1]} : vector<8x128xf32> to vector<8x32xf32>
    %110 = vector.extract_strided_slice %107 {offsets = [0, 32], sizes = [8, 32], strides = [1, 1]} : vector<8x128xf32> to vector<8x32xf32>
    %111 = vector.extract_strided_slice %108 {offsets = [0, 64], sizes = [8, 32], strides = [1, 1]} : vector<8x128xf32> to vector<8x32xf32>
    %112 = vector.extract_strided_slice %107 {offsets = [0, 96], sizes = [8, 32], strides = [1, 1]} : vector<8x128xf32> to vector<8x32xf32>
    %113 = arith.mulf %110, %102 : vector<8x32xf32>
    %114 = arith.mulf %109, %111 : vector<8x32xf32>
    %115 = arith.addf %113, %114 : vector<8x32xf32>
    %116 = math.tanh %115 : vector<8x32xf32>
    %117 = arith.mulf %112, %116 : vector<8x32xf32>
    %c0_59 = arith.constant 0 : index
    %c0_60 = arith.constant 0 : index
    %118 = vector.load %arg8[%c0_59, %c0_60] : memref<8x32xf32, #tpu.memory_space<vmem>>, vector<8x32xf32>
    tpu.vector_store %arg8[%c0_59, %c0_60], %117 {strides = array<i32>} : memref<8x32xf32, #tpu.memory_space<vmem>>, vector<8x32xf32>,
    %c0_61 = arith.constant 0 : index
    %c0_62 = arith.constant 0 : index
    %119 = vector.load %arg9[%c0_61, %c0_62] : memref<8x32xf32, #tpu.memory_space<vmem>>, vector<8x32xf32>
    tpu.vector_store %arg9[%c0_61, %c0_62], %115 {strides = array<i32>} : memref<8x32xf32, #tpu.memory_space<vmem>>, vector<8x32xf32>,
    %c0_63 = arith.constant 0 : index
    %c0_64 = arith.constant 0 : index
    %120 = vector.load %arg10[%c0_63, %c0_64] : memref<8x32xf32, #tpu.memory_space<vmem>>, vector<8x32xf32>
    %121 = tpu.concatenate %117, %120 in 1 : vector<8x32xf32>, vector<8x32xf32> -> vector<8x64xf32>
    %cst_65 = arith.constant dense<0.000000e+00> : vector<8x128xf32>
    %122 = tpu.matmul %121, %4, %cst_65 {dimension_numbers = #tpu.dot_dimension_numbers<[1], [0], [0], [1], [0, 0, 1, 1], [], []>} : vector<8x64xf32>, vector<64x128xf32>, vector<8x128xf32> -> vector<8x128xf32>
    %123 = vector.broadcast %5 : vector<1x128xf32> to vector<8x128xf32>
    %124 = arith.addf %122, %123 : vector<8x128xf32>
    %c0_66 = arith.constant 0 : index
    %c0_67 = arith.constant 0 : index
    %125 = vector.load %arg11[%c0_66, %c0_67] : memref<8x32xf32, #tpu.memory_space<vmem>>, vector<8x32xf32>
    %126 = arith.negf %124 : vector<8x128xf32>
    %127 = math.exp %126 : vector<8x128xf32>
    %cst_68 = arith.constant 1.000000e+00 : f32
    %128 = vector.broadcast %cst_68 : f32 to vector<8x128xf32>
    %129 = arith.addf %128, %127 : vector<8x128xf32>
    %130 = arith.divf %128, %129 : vector<8x128xf32>
    %131 = math.tanh %124 : vector<8x128xf32>
    %132 = vector.extract_strided_slice %130 {offsets = [0, 0], sizes = [8, 32], strides = [1, 1]} : vector<8x128xf32> to vector<8x32xf32>
    %133 = vector.extract_strided_slice %130 {offsets = [0, 32], sizes = [8, 32], strides = [1, 1]} : vector<8x128xf32> to vector<8x32xf32>
    %134 = vector.extract_strided_slice %131 {offsets = [0, 64], sizes = [8, 32], strides = [1, 1]} : vector<8x128xf32> to vector<8x32xf32>
    %135 = vector.extract_strided_slice %130 {offsets = [0, 96], sizes = [8, 32], strides = [1, 1]} : vector<8x128xf32> to vector<8x32xf32>
    %136 = arith.mulf %133, %125 : vector<8x32xf32>
    %137 = arith.mulf %132, %134 : vector<8x32xf32>
    %138 = arith.addf %136, %137 : vector<8x32xf32>
    %139 = math.tanh %138 : vector<8x32xf32>
    %140 = arith.mulf %135, %139 : vector<8x32xf32>
    %c0_69 = arith.constant 0 : index
    %c0_70 = arith.constant 0 : index
    %141 = vector.load %arg10[%c0_69, %c0_70] : memref<8x32xf32, #tpu.memory_space<vmem>>, vector<8x32xf32>
    tpu.vector_store %arg10[%c0_69, %c0_70], %140 {strides = array<i32>} : memref<8x32xf32, #tpu.memory_space<vmem>>, vector<8x32xf32>,
    %c0_71 = arith.constant 0 : index
    %c0_72 = arith.constant 0 : index
    %142 = vector.load %arg11[%c0_71, %c0_72] : memref<8x32xf32, #tpu.memory_space<vmem>>, vector<8x32xf32>
    tpu.vector_store %arg11[%c0_71, %c0_72], %138 {strides = array<i32>} : memref<8x32xf32, #tpu.memory_space<vmem>>, vector<8x32xf32>,
    %c16_73 = arith.constant 16 : index
    %c0_74 = arith.constant 0 : index
    %143 = vector.load %arg12[%c16_73, %c0_74] : memref<64x32xf32, #tpu.memory_space<vmem>>, vector<8x32xf32>
    tpu.vector_store %arg12[%c16_73, %c0_74], %140 {strides = array<i32>} : memref<64x32xf32, #tpu.memory_space<vmem>>, vector<8x32xf32>,
    %c24 = arith.constant 24 : index
    %c0_75 = arith.constant 0 : index
    %144 = vector.load %arg1[%c24, %c0_75] : memref<64x128xf32, #tpu.memory_space<vmem>>, vector<8x128xf32>
    %c0_76 = arith.constant 0 : index
    %c0_77 = arith.constant 0 : index
    %145 = vector.load %arg8[%c0_76, %c0_77] : memref<8x32xf32, #tpu.memory_space<vmem>>, vector<8x32xf32>
    %cst_78 = arith.constant dense<0.000000e+00> : vector<8x128xf32>
    %146 = tpu.matmul %145, %3, %cst_78 {dimension_numbers = #tpu.dot_dimension_numbers<[1], [0], [0], [1], [0, 0, 1, 1], [], []>} : vector<8x32xf32>, vector<32x128xf32>, vector<8x128xf32> -> vector<8x128xf32>
    %147 = arith.addf %144, %146 : vector<8x128xf32>
    %c0_79 = arith.constant 0 : index
    %c0_80 = arith.constant 0 : index
    %148 = vector.load %arg9[%c0_79, %c0_80] : memref<8x32xf32, #tpu.memory_space<vmem>>, vector<8x32xf32>
    %149 = arith.negf %147 : vector<8x128xf32>
    %150 = math.exp %149 : vector<8x128xf32>
    %cst_81 = arith.constant 1.000000e+00 : f32
    %151 = vector.broadcast %cst_81 : f32 to vector<8x128xf32>
    %152 = arith.addf %151, %150 : vector<8x128xf32>
    %153 = arith.divf %151, %152 : vector<8x128xf32>
    %154 = math.tanh %147 : vector<8x128xf32>
    %155 = vector.extract_strided_slice %153 {offsets = [0, 0], sizes = [8, 32], strides = [1, 1]} : vector<8x128xf32> to vector<8x32xf32>
    %156 = vector.extract_strided_slice %153 {offsets = [0, 32], sizes = [8, 32], strides = [1, 1]} : vector<8x128xf32> to vector<8x32xf32>
    %157 = vector.extract_strided_slice %154 {offsets = [0, 64], sizes = [8, 32], strides = [1, 1]} : vector<8x128xf32> to vector<8x32xf32>
    %158 = vector.extract_strided_slice %153 {offsets = [0, 96], sizes = [8, 32], strides = [1, 1]} : vector<8x128xf32> to vector<8x32xf32>
    %159 = arith.mulf %156, %148 : vector<8x32xf32>
    %160 = arith.mulf %155, %157 : vector<8x32xf32>
    %161 = arith.addf %159, %160 : vector<8x32xf32>
    %162 = math.tanh %161 : vector<8x32xf32>
    %163 = arith.mulf %158, %162 : vector<8x32xf32>
    %c0_82 = arith.constant 0 : index
    %c0_83 = arith.constant 0 : index
    %164 = vector.load %arg8[%c0_82, %c0_83] : memref<8x32xf32, #tpu.memory_space<vmem>>, vector<8x32xf32>
    tpu.vector_store %arg8[%c0_82, %c0_83], %163 {strides = array<i32>} : memref<8x32xf32, #tpu.memory_space<vmem>>, vector<8x32xf32>,
    %c0_84 = arith.constant 0 : index
    %c0_85 = arith.constant 0 : index
    %165 = vector.load %arg9[%c0_84, %c0_85] : memref<8x32xf32, #tpu.memory_space<vmem>>, vector<8x32xf32>
    tpu.vector_store %arg9[%c0_84, %c0_85], %161 {strides = array<i32>} : memref<8x32xf32, #tpu.memory_space<vmem>>, vector<8x32xf32>,
    %c0_86 = arith.constant 0 : index
    %c0_87 = arith.constant 0 : index
    %166 = vector.load %arg10[%c0_86, %c0_87] : memref<8x32xf32, #tpu.memory_space<vmem>>, vector<8x32xf32>
    %167 = tpu.concatenate %163, %166 in 1 : vector<8x32xf32>, vector<8x32xf32> -> vector<8x64xf32>
    %cst_88 = arith.constant dense<0.000000e+00> : vector<8x128xf32>
    %168 = tpu.matmul %167, %4, %cst_88 {dimension_numbers = #tpu.dot_dimension_numbers<[1], [0], [0], [1], [0, 0, 1, 1], [], []>} : vector<8x64xf32>, vector<64x128xf32>, vector<8x128xf32> -> vector<8x128xf32>
    %169 = vector.broadcast %5 : vector<1x128xf32> to vector<8x128xf32>
    %170 = arith.addf %168, %169 : vector<8x128xf32>
    %c0_89 = arith.constant 0 : index
    %c0_90 = arith.constant 0 : index
    %171 = vector.load %arg11[%c0_89, %c0_90] : memref<8x32xf32, #tpu.memory_space<vmem>>, vector<8x32xf32>
    %172 = arith.negf %170 : vector<8x128xf32>
    %173 = math.exp %172 : vector<8x128xf32>
    %cst_91 = arith.constant 1.000000e+00 : f32
    %174 = vector.broadcast %cst_91 : f32 to vector<8x128xf32>
    %175 = arith.addf %174, %173 : vector<8x128xf32>
    %176 = arith.divf %174, %175 : vector<8x128xf32>
    %177 = math.tanh %170 : vector<8x128xf32>
    %178 = vector.extract_strided_slice %176 {offsets = [0, 0], sizes = [8, 32], strides = [1, 1]} : vector<8x128xf32> to vector<8x32xf32>
    %179 = vector.extract_strided_slice %176 {offsets = [0, 32], sizes = [8, 32], strides = [1, 1]} : vector<8x128xf32> to vector<8x32xf32>
    %180 = vector.extract_strided_slice %177 {offsets = [0, 64], sizes = [8, 32], strides = [1, 1]} : vector<8x128xf32> to vector<8x32xf32>
    %181 = vector.extract_strided_slice %176 {offsets = [0, 96], sizes = [8, 32], strides = [1, 1]} : vector<8x128xf32> to vector<8x32xf32>
    %182 = arith.mulf %179, %171 : vector<8x32xf32>
    %183 = arith.mulf %178, %180 : vector<8x32xf32>
    %184 = arith.addf %182, %183 : vector<8x32xf32>
    %185 = math.tanh %184 : vector<8x32xf32>
    %186 = arith.mulf %181, %185 : vector<8x32xf32>
    %c0_92 = arith.constant 0 : index
    %c0_93 = arith.constant 0 : index
    %187 = vector.load %arg10[%c0_92, %c0_93] : memref<8x32xf32, #tpu.memory_space<vmem>>, vector<8x32xf32>
    tpu.vector_store %arg10[%c0_92, %c0_93], %186 {strides = array<i32>} : memref<8x32xf32, #tpu.memory_space<vmem>>, vector<8x32xf32>,
    %c0_94 = arith.constant 0 : index
    %c0_95 = arith.constant 0 : index
    %188 = vector.load %arg11[%c0_94, %c0_95] : memref<8x32xf32, #tpu.memory_space<vmem>>, vector<8x32xf32>
    tpu.vector_store %arg11[%c0_94, %c0_95], %184 {strides = array<i32>} : memref<8x32xf32, #tpu.memory_space<vmem>>, vector<8x32xf32>,
    %c24_96 = arith.constant 24 : index
    %c0_97 = arith.constant 0 : index
    %189 = vector.load %arg12[%c24_96, %c0_97] : memref<64x32xf32, #tpu.memory_space<vmem>>, vector<8x32xf32>
    tpu.vector_store %arg12[%c24_96, %c0_97], %186 {strides = array<i32>} : memref<64x32xf32, #tpu.memory_space<vmem>>, vector<8x32xf32>,
    %c32 = arith.constant 32 : index
    %c0_98 = arith.constant 0 : index
    %190 = vector.load %arg1[%c32, %c0_98] : memref<64x128xf32, #tpu.memory_space<vmem>>, vector<8x128xf32>
    %c0_99 = arith.constant 0 : index
    %c0_100 = arith.constant 0 : index
    %191 = vector.load %arg8[%c0_99, %c0_100] : memref<8x32xf32, #tpu.memory_space<vmem>>, vector<8x32xf32>
    %cst_101 = arith.constant dense<0.000000e+00> : vector<8x128xf32>
    %192 = tpu.matmul %191, %3, %cst_101 {dimension_numbers = #tpu.dot_dimension_numbers<[1], [0], [0], [1], [0, 0, 1, 1], [], []>} : vector<8x32xf32>, vector<32x128xf32>, vector<8x128xf32> -> vector<8x128xf32>
    %193 = arith.addf %190, %192 : vector<8x128xf32>
    %c0_102 = arith.constant 0 : index
    %c0_103 = arith.constant 0 : index
    %194 = vector.load %arg9[%c0_102, %c0_103] : memref<8x32xf32, #tpu.memory_space<vmem>>, vector<8x32xf32>
    %195 = arith.negf %193 : vector<8x128xf32>
    %196 = math.exp %195 : vector<8x128xf32>
    %cst_104 = arith.constant 1.000000e+00 : f32
    %197 = vector.broadcast %cst_104 : f32 to vector<8x128xf32>
    %198 = arith.addf %197, %196 : vector<8x128xf32>
    %199 = arith.divf %197, %198 : vector<8x128xf32>
    %200 = math.tanh %193 : vector<8x128xf32>
    %201 = vector.extract_strided_slice %199 {offsets = [0, 0], sizes = [8, 32], strides = [1, 1]} : vector<8x128xf32> to vector<8x32xf32>
    %202 = vector.extract_strided_slice %199 {offsets = [0, 32], sizes = [8, 32], strides = [1, 1]} : vector<8x128xf32> to vector<8x32xf32>
    %203 = vector.extract_strided_slice %200 {offsets = [0, 64], sizes = [8, 32], strides = [1, 1]} : vector<8x128xf32> to vector<8x32xf32>
    %204 = vector.extract_strided_slice %199 {offsets = [0, 96], sizes = [8, 32], strides = [1, 1]} : vector<8x128xf32> to vector<8x32xf32>
    %205 = arith.mulf %202, %194 : vector<8x32xf32>
    %206 = arith.mulf %201, %203 : vector<8x32xf32>
    %207 = arith.addf %205, %206 : vector<8x32xf32>
    %208 = math.tanh %207 : vector<8x32xf32>
    %209 = arith.mulf %204, %208 : vector<8x32xf32>
    %c0_105 = arith.constant 0 : index
    %c0_106 = arith.constant 0 : index
    %210 = vector.load %arg8[%c0_105, %c0_106] : memref<8x32xf32, #tpu.memory_space<vmem>>, vector<8x32xf32>
    tpu.vector_store %arg8[%c0_105, %c0_106], %209 {strides = array<i32>} : memref<8x32xf32, #tpu.memory_space<vmem>>, vector<8x32xf32>,
    %c0_107 = arith.constant 0 : index
    %c0_108 = arith.constant 0 : index
    %211 = vector.load %arg9[%c0_107, %c0_108] : memref<8x32xf32, #tpu.memory_space<vmem>>, vector<8x32xf32>
    tpu.vector_store %arg9[%c0_107, %c0_108], %207 {strides = array<i32>} : memref<8x32xf32, #tpu.memory_space<vmem>>, vector<8x32xf32>,
    %c0_109 = arith.constant 0 : index
    %c0_110 = arith.constant 0 : index
    %212 = vector.load %arg10[%c0_109, %c0_110] : memref<8x32xf32, #tpu.memory_space<vmem>>, vector<8x32xf32>
    %213 = tpu.concatenate %209, %212 in 1 : vector<8x32xf32>, vector<8x32xf32> -> vector<8x64xf32>
    %cst_111 = arith.constant dense<0.000000e+00> : vector<8x128xf32>
    %214 = tpu.matmul %213, %4, %cst_111 {dimension_numbers = #tpu.dot_dimension_numbers<[1], [0], [0], [1], [0, 0, 1, 1], [], []>} : vector<8x64xf32>, vector<64x128xf32>, vector<8x128xf32> -> vector<8x128xf32>
    %215 = vector.broadcast %5 : vector<1x128xf32> to vector<8x128xf32>
    %216 = arith.addf %214, %215 : vector<8x128xf32>
    %c0_112 = arith.constant 0 : index
    %c0_113 = arith.constant 0 : index
    %217 = vector.load %arg11[%c0_112, %c0_113] : memref<8x32xf32, #tpu.memory_space<vmem>>, vector<8x32xf32>
    %218 = arith.negf %216 : vector<8x128xf32>
    %219 = math.exp %218 : vector<8x128xf32>
    %cst_114 = arith.constant 1.000000e+00 : f32
    %220 = vector.broadcast %cst_114 : f32 to vector<8x128xf32>
    %221 = arith.addf %220, %219 : vector<8x128xf32>
    %222 = arith.divf %220, %221 : vector<8x128xf32>
    %223 = math.tanh %216 : vector<8x128xf32>
    %224 = vector.extract_strided_slice %222 {offsets = [0, 0], sizes = [8, 32], strides = [1, 1]} : vector<8x128xf32> to vector<8x32xf32>
    %225 = vector.extract_strided_slice %222 {offsets = [0, 32], sizes = [8, 32], strides = [1, 1]} : vector<8x128xf32> to vector<8x32xf32>
    %226 = vector.extract_strided_slice %223 {offsets = [0, 64], sizes = [8, 32], strides = [1, 1]} : vector<8x128xf32> to vector<8x32xf32>
    %227 = vector.extract_strided_slice %222 {offsets = [0, 96], sizes = [8, 32], strides = [1, 1]} : vector<8x128xf32> to vector<8x32xf32>
    %228 = arith.mulf %225, %217 : vector<8x32xf32>
    %229 = arith.mulf %224, %226 : vector<8x32xf32>
    %230 = arith.addf %228, %229 : vector<8x32xf32>
    %231 = math.tanh %230 : vector<8x32xf32>
    %232 = arith.mulf %227, %231 : vector<8x32xf32>
    %c0_115 = arith.constant 0 : index
    %c0_116 = arith.constant 0 : index
    %233 = vector.load %arg10[%c0_115, %c0_116] : memref<8x32xf32, #tpu.memory_space<vmem>>, vector<8x32xf32>
    tpu.vector_store %arg10[%c0_115, %c0_116], %232 {strides = array<i32>} : memref<8x32xf32, #tpu.memory_space<vmem>>, vector<8x32xf32>,
    %c0_117 = arith.constant 0 : index
    %c0_118 = arith.constant 0 : index
    %234 = vector.load %arg11[%c0_117, %c0_118] : memref<8x32xf32, #tpu.memory_space<vmem>>, vector<8x32xf32>
    tpu.vector_store %arg11[%c0_117, %c0_118], %230 {strides = array<i32>} : memref<8x32xf32, #tpu.memory_space<vmem>>, vector<8x32xf32>,
    %c32_119 = arith.constant 32 : index
    %c0_120 = arith.constant 0 : index
    %235 = vector.load %arg12[%c32_119, %c0_120] : memref<64x32xf32, #tpu.memory_space<vmem>>, vector<8x32xf32>
    tpu.vector_store %arg12[%c32_119, %c0_120], %232 {strides = array<i32>} : memref<64x32xf32, #tpu.memory_space<vmem>>, vector<8x32xf32>,
    %c40 = arith.constant 40 : index
    %c0_121 = arith.constant 0 : index
    %236 = vector.load %arg1[%c40, %c0_121] : memref<64x128xf32, #tpu.memory_space<vmem>>, vector<8x128xf32>
    %c0_122 = arith.constant 0 : index
    %c0_123 = arith.constant 0 : index
    %237 = vector.load %arg8[%c0_122, %c0_123] : memref<8x32xf32, #tpu.memory_space<vmem>>, vector<8x32xf32>
    %cst_124 = arith.constant dense<0.000000e+00> : vector<8x128xf32>
    %238 = tpu.matmul %237, %3, %cst_124 {dimension_numbers = #tpu.dot_dimension_numbers<[1], [0], [0], [1], [0, 0, 1, 1], [], []>} : vector<8x32xf32>, vector<32x128xf32>, vector<8x128xf32> -> vector<8x128xf32>
    %239 = arith.addf %236, %238 : vector<8x128xf32>
    %c0_125 = arith.constant 0 : index
    %c0_126 = arith.constant 0 : index
    %240 = vector.load %arg9[%c0_125, %c0_126] : memref<8x32xf32, #tpu.memory_space<vmem>>, vector<8x32xf32>
    %241 = arith.negf %239 : vector<8x128xf32>
    %242 = math.exp %241 : vector<8x128xf32>
    %cst_127 = arith.constant 1.000000e+00 : f32
    %243 = vector.broadcast %cst_127 : f32 to vector<8x128xf32>
    %244 = arith.addf %243, %242 : vector<8x128xf32>
    %245 = arith.divf %243, %244 : vector<8x128xf32>
    %246 = math.tanh %239 : vector<8x128xf32>
    %247 = vector.extract_strided_slice %245 {offsets = [0, 0], sizes = [8, 32], strides = [1, 1]} : vector<8x128xf32> to vector<8x32xf32>
    %248 = vector.extract_strided_slice %245 {offsets = [0, 32], sizes = [8, 32], strides = [1, 1]} : vector<8x128xf32> to vector<8x32xf32>
    %249 = vector.extract_strided_slice %246 {offsets = [0, 64], sizes = [8, 32], strides = [1, 1]} : vector<8x128xf32> to vector<8x32xf32>
    %250 = vector.extract_strided_slice %245 {offsets = [0, 96], sizes = [8, 32], strides = [1, 1]} : vector<8x128xf32> to vector<8x32xf32>
    %251 = arith.mulf %248, %240 : vector<8x32xf32>
    %252 = arith.mulf %247, %249 : vector<8x32xf32>
    %253 = arith.addf %251, %252 : vector<8x32xf32>
    %254 = math.tanh %253 : vector<8x32xf32>
    %255 = arith.mulf %250, %254 : vector<8x32xf32>
    %c0_128 = arith.constant 0 : index
    %c0_129 = arith.constant 0 : index
    %256 = vector.load %arg8[%c0_128, %c0_129] : memref<8x32xf32, #tpu.memory_space<vmem>>, vector<8x32xf32>
    tpu.vector_store %arg8[%c0_128, %c0_129], %255 {strides = array<i32>} : memref<8x32xf32, #tpu.memory_space<vmem>>, vector<8x32xf32>,
    %c0_130 = arith.constant 0 : index
    %c0_131 = arith.constant 0 : index
    %257 = vector.load %arg9[%c0_130, %c0_131] : memref<8x32xf32, #tpu.memory_space<vmem>>, vector<8x32xf32>
    tpu.vector_store %arg9[%c0_130, %c0_131], %253 {strides = array<i32>} : memref<8x32xf32, #tpu.memory_space<vmem>>, vector<8x32xf32>,
    %c0_132 = arith.constant 0 : index
    %c0_133 = arith.constant 0 : index
    %258 = vector.load %arg10[%c0_132, %c0_133] : memref<8x32xf32, #tpu.memory_space<vmem>>, vector<8x32xf32>
    %259 = tpu.concatenate %255, %258 in 1 : vector<8x32xf32>, vector<8x32xf32> -> vector<8x64xf32>
    %cst_134 = arith.constant dense<0.000000e+00> : vector<8x128xf32>
    %260 = tpu.matmul %259, %4, %cst_134 {dimension_numbers = #tpu.dot_dimension_numbers<[1], [0], [0], [1], [0, 0, 1, 1], [], []>} : vector<8x64xf32>, vector<64x128xf32>, vector<8x128xf32> -> vector<8x128xf32>
    %261 = vector.broadcast %5 : vector<1x128xf32> to vector<8x128xf32>
    %262 = arith.addf %260, %261 : vector<8x128xf32>
    %c0_135 = arith.constant 0 : index
    %c0_136 = arith.constant 0 : index
    %263 = vector.load %arg11[%c0_135, %c0_136] : memref<8x32xf32, #tpu.memory_space<vmem>>, vector<8x32xf32>
    %264 = arith.negf %262 : vector<8x128xf32>
    %265 = math.exp %264 : vector<8x128xf32>
    %cst_137 = arith.constant 1.000000e+00 : f32
    %266 = vector.broadcast %cst_137 : f32 to vector<8x128xf32>
    %267 = arith.addf %266, %265 : vector<8x128xf32>
    %268 = arith.divf %266, %267 : vector<8x128xf32>
    %269 = math.tanh %262 : vector<8x128xf32>
    %270 = vector.extract_strided_slice %268 {offsets = [0, 0], sizes = [8, 32], strides = [1, 1]} : vector<8x128xf32> to vector<8x32xf32>
    %271 = vector.extract_strided_slice %268 {offsets = [0, 32], sizes = [8, 32], strides = [1, 1]} : vector<8x128xf32> to vector<8x32xf32>
    %272 = vector.extract_strided_slice %269 {offsets = [0, 64], sizes = [8, 32], strides = [1, 1]} : vector<8x128xf32> to vector<8x32xf32>
    %273 = vector.extract_strided_slice %268 {offsets = [0, 96], sizes = [8, 32], strides = [1, 1]} : vector<8x128xf32> to vector<8x32xf32>
    %274 = arith.mulf %271, %263 : vector<8x32xf32>
    %275 = arith.mulf %270, %272 : vector<8x32xf32>
    %276 = arith.addf %274, %275 : vector<8x32xf32>
    %277 = math.tanh %276 : vector<8x32xf32>
    %278 = arith.mulf %273, %277 : vector<8x32xf32>
    %c0_138 = arith.constant 0 : index
    %c0_139 = arith.constant 0 : index
    %279 = vector.load %arg10[%c0_138, %c0_139] : memref<8x32xf32, #tpu.memory_space<vmem>>, vector<8x32xf32>
    tpu.vector_store %arg10[%c0_138, %c0_139], %278 {strides = array<i32>} : memref<8x32xf32, #tpu.memory_space<vmem>>, vector<8x32xf32>,
    %c0_140 = arith.constant 0 : index
    %c0_141 = arith.constant 0 : index
    %280 = vector.load %arg11[%c0_140, %c0_141] : memref<8x32xf32, #tpu.memory_space<vmem>>, vector<8x32xf32>
    tpu.vector_store %arg11[%c0_140, %c0_141], %276 {strides = array<i32>} : memref<8x32xf32, #tpu.memory_space<vmem>>, vector<8x32xf32>,
    %c40_142 = arith.constant 40 : index
    %c0_143 = arith.constant 0 : index
    %281 = vector.load %arg12[%c40_142, %c0_143] : memref<64x32xf32, #tpu.memory_space<vmem>>, vector<8x32xf32>
    tpu.vector_store %arg12[%c40_142, %c0_143], %278 {strides = array<i32>} : memref<64x32xf32, #tpu.memory_space<vmem>>, vector<8x32xf32>,
    %c48 = arith.constant 48 : index
    %c0_144 = arith.constant 0 : index
    %282 = vector.load %arg1[%c48, %c0_144] : memref<64x128xf32, #tpu.memory_space<vmem>>, vector<8x128xf32>
    %c0_145 = arith.constant 0 : index
    %c0_146 = arith.constant 0 : index
    %283 = vector.load %arg8[%c0_145, %c0_146] : memref<8x32xf32, #tpu.memory_space<vmem>>, vector<8x32xf32>
    %cst_147 = arith.constant dense<0.000000e+00> : vector<8x128xf32>
    %284 = tpu.matmul %283, %3, %cst_147 {dimension_numbers = #tpu.dot_dimension_numbers<[1], [0], [0], [1], [0, 0, 1, 1], [], []>} : vector<8x32xf32>, vector<32x128xf32>, vector<8x128xf32> -> vector<8x128xf32>
    %285 = arith.addf %282, %284 : vector<8x128xf32>
    %c0_148 = arith.constant 0 : index
    %c0_149 = arith.constant 0 : index
    %286 = vector.load %arg9[%c0_148, %c0_149] : memref<8x32xf32, #tpu.memory_space<vmem>>, vector<8x32xf32>
    %287 = arith.negf %285 : vector<8x128xf32>
    %288 = math.exp %287 : vector<8x128xf32>
    %cst_150 = arith.constant 1.000000e+00 : f32
    %289 = vector.broadcast %cst_150 : f32 to vector<8x128xf32>
    %290 = arith.addf %289, %288 : vector<8x128xf32>
    %291 = arith.divf %289, %290 : vector<8x128xf32>
    %292 = math.tanh %285 : vector<8x128xf32>
    %293 = vector.extract_strided_slice %291 {offsets = [0, 0], sizes = [8, 32], strides = [1, 1]} : vector<8x128xf32> to vector<8x32xf32>
    %294 = vector.extract_strided_slice %291 {offsets = [0, 32], sizes = [8, 32], strides = [1, 1]} : vector<8x128xf32> to vector<8x32xf32>
    %295 = vector.extract_strided_slice %292 {offsets = [0, 64], sizes = [8, 32], strides = [1, 1]} : vector<8x128xf32> to vector<8x32xf32>
    %296 = vector.extract_strided_slice %291 {offsets = [0, 96], sizes = [8, 32], strides = [1, 1]} : vector<8x128xf32> to vector<8x32xf32>
    %297 = arith.mulf %294, %286 : vector<8x32xf32>
    %298 = arith.mulf %293, %295 : vector<8x32xf32>
    %299 = arith.addf %297, %298 : vector<8x32xf32>
    %300 = math.tanh %299 : vector<8x32xf32>
    %301 = arith.mulf %296, %300 : vector<8x32xf32>
    %c0_151 = arith.constant 0 : index
    %c0_152 = arith.constant 0 : index
    %302 = vector.load %arg8[%c0_151, %c0_152] : memref<8x32xf32, #tpu.memory_space<vmem>>, vector<8x32xf32>
    tpu.vector_store %arg8[%c0_151, %c0_152], %301 {strides = array<i32>} : memref<8x32xf32, #tpu.memory_space<vmem>>, vector<8x32xf32>,
    %c0_153 = arith.constant 0 : index
    %c0_154 = arith.constant 0 : index
    %303 = vector.load %arg9[%c0_153, %c0_154] : memref<8x32xf32, #tpu.memory_space<vmem>>, vector<8x32xf32>
    tpu.vector_store %arg9[%c0_153, %c0_154], %299 {strides = array<i32>} : memref<8x32xf32, #tpu.memory_space<vmem>>, vector<8x32xf32>,
    %c0_155 = arith.constant 0 : index
    %c0_156 = arith.constant 0 : index
    %304 = vector.load %arg10[%c0_155, %c0_156] : memref<8x32xf32, #tpu.memory_space<vmem>>, vector<8x32xf32>
    %305 = tpu.concatenate %301, %304 in 1 : vector<8x32xf32>, vector<8x32xf32> -> vector<8x64xf32>
    %cst_157 = arith.constant dense<0.000000e+00> : vector<8x128xf32>
    %306 = tpu.matmul %305, %4, %cst_157 {dimension_numbers = #tpu.dot_dimension_numbers<[1], [0], [0], [1], [0, 0, 1, 1], [], []>} : vector<8x64xf32>, vector<64x128xf32>, vector<8x128xf32> -> vector<8x128xf32>
    %307 = vector.broadcast %5 : vector<1x128xf32> to vector<8x128xf32>
    %308 = arith.addf %306, %307 : vector<8x128xf32>
    %c0_158 = arith.constant 0 : index
    %c0_159 = arith.constant 0 : index
    %309 = vector.load %arg11[%c0_158, %c0_159] : memref<8x32xf32, #tpu.memory_space<vmem>>, vector<8x32xf32>
    %310 = arith.negf %308 : vector<8x128xf32>
    %311 = math.exp %310 : vector<8x128xf32>
    %cst_160 = arith.constant 1.000000e+00 : f32
    %312 = vector.broadcast %cst_160 : f32 to vector<8x128xf32>
    %313 = arith.addf %312, %311 : vector<8x128xf32>
    %314 = arith.divf %312, %313 : vector<8x128xf32>
    %315 = math.tanh %308 : vector<8x128xf32>
    %316 = vector.extract_strided_slice %314 {offsets = [0, 0], sizes = [8, 32], strides = [1, 1]} : vector<8x128xf32> to vector<8x32xf32>
    %317 = vector.extract_strided_slice %314 {offsets = [0, 32], sizes = [8, 32], strides = [1, 1]} : vector<8x128xf32> to vector<8x32xf32>
    %318 = vector.extract_strided_slice %315 {offsets = [0, 64], sizes = [8, 32], strides = [1, 1]} : vector<8x128xf32> to vector<8x32xf32>
    %319 = vector.extract_strided_slice %314 {offsets = [0, 96], sizes = [8, 32], strides = [1, 1]} : vector<8x128xf32> to vector<8x32xf32>
    %320 = arith.mulf %317, %309 : vector<8x32xf32>
    %321 = arith.mulf %316, %318 : vector<8x32xf32>
    %322 = arith.addf %320, %321 : vector<8x32xf32>
    %323 = math.tanh %322 : vector<8x32xf32>
    %324 = arith.mulf %319, %323 : vector<8x32xf32>
    %c0_161 = arith.constant 0 : index
    %c0_162 = arith.constant 0 : index
    %325 = vector.load %arg10[%c0_161, %c0_162] : memref<8x32xf32, #tpu.memory_space<vmem>>, vector<8x32xf32>
    tpu.vector_store %arg10[%c0_161, %c0_162], %324 {strides = array<i32>} : memref<8x32xf32, #tpu.memory_space<vmem>>, vector<8x32xf32>,
    %c0_163 = arith.constant 0 : index
    %c0_164 = arith.constant 0 : index
    %326 = vector.load %arg11[%c0_163, %c0_164] : memref<8x32xf32, #tpu.memory_space<vmem>>, vector<8x32xf32>
    tpu.vector_store %arg11[%c0_163, %c0_164], %322 {strides = array<i32>} : memref<8x32xf32, #tpu.memory_space<vmem>>, vector<8x32xf32>,
    %c48_165 = arith.constant 48 : index
    %c0_166 = arith.constant 0 : index
    %327 = vector.load %arg12[%c48_165, %c0_166] : memref<64x32xf32, #tpu.memory_space<vmem>>, vector<8x32xf32>
    tpu.vector_store %arg12[%c48_165, %c0_166], %324 {strides = array<i32>} : memref<64x32xf32, #tpu.memory_space<vmem>>, vector<8x32xf32>,
    %c56 = arith.constant 56 : index
    %c0_167 = arith.constant 0 : index
    %328 = vector.load %arg1[%c56, %c0_167] : memref<64x128xf32, #tpu.memory_space<vmem>>, vector<8x128xf32>
    %c0_168 = arith.constant 0 : index
    %c0_169 = arith.constant 0 : index
    %329 = vector.load %arg8[%c0_168, %c0_169] : memref<8x32xf32, #tpu.memory_space<vmem>>, vector<8x32xf32>
    %cst_170 = arith.constant dense<0.000000e+00> : vector<8x128xf32>
    %330 = tpu.matmul %329, %3, %cst_170 {dimension_numbers = #tpu.dot_dimension_numbers<[1], [0], [0], [1], [0, 0, 1, 1], [], []>} : vector<8x32xf32>, vector<32x128xf32>, vector<8x128xf32> -> vector<8x128xf32>
    %331 = arith.addf %328, %330 : vector<8x128xf32>
    %c0_171 = arith.constant 0 : index
    %c0_172 = arith.constant 0 : index
    %332 = vector.load %arg9[%c0_171, %c0_172] : memref<8x32xf32, #tpu.memory_space<vmem>>, vector<8x32xf32>
    %333 = arith.negf %331 : vector<8x128xf32>
    %334 = math.exp %333 : vector<8x128xf32>
    %cst_173 = arith.constant 1.000000e+00 : f32
    %335 = vector.broadcast %cst_173 : f32 to vector<8x128xf32>
    %336 = arith.addf %335, %334 : vector<8x128xf32>
    %337 = arith.divf %335, %336 : vector<8x128xf32>
    %338 = math.tanh %331 : vector<8x128xf32>
    %339 = vector.extract_strided_slice %337 {offsets = [0, 0], sizes = [8, 32], strides = [1, 1]} : vector<8x128xf32> to vector<8x32xf32>
    %340 = vector.extract_strided_slice %337 {offsets = [0, 32], sizes = [8, 32], strides = [1, 1]} : vector<8x128xf32> to vector<8x32xf32>
    %341 = vector.extract_strided_slice %338 {offsets = [0, 64], sizes = [8, 32], strides = [1, 1]} : vector<8x128xf32> to vector<8x32xf32>
    %342 = vector.extract_strided_slice %337 {offsets = [0, 96], sizes = [8, 32], strides = [1, 1]} : vector<8x128xf32> to vector<8x32xf32>
    %343 = arith.mulf %340, %332 : vector<8x32xf32>
    %344 = arith.mulf %339, %341 : vector<8x32xf32>
    %345 = arith.addf %343, %344 : vector<8x32xf32>
    %346 = math.tanh %345 : vector<8x32xf32>
    %347 = arith.mulf %342, %346 : vector<8x32xf32>
    %c0_174 = arith.constant 0 : index
    %c0_175 = arith.constant 0 : index
    %348 = vector.load %arg8[%c0_174, %c0_175] : memref<8x32xf32, #tpu.memory_space<vmem>>, vector<8x32xf32>
    tpu.vector_store %arg8[%c0_174, %c0_175], %347 {strides = array<i32>} : memref<8x32xf32, #tpu.memory_space<vmem>>, vector<8x32xf32>,
    %c0_176 = arith.constant 0 : index
    %c0_177 = arith.constant 0 : index
    %349 = vector.load %arg9[%c0_176, %c0_177] : memref<8x32xf32, #tpu.memory_space<vmem>>, vector<8x32xf32>
    tpu.vector_store %arg9[%c0_176, %c0_177], %345 {strides = array<i32>} : memref<8x32xf32, #tpu.memory_space<vmem>>, vector<8x32xf32>,
    %c0_178 = arith.constant 0 : index
    %c0_179 = arith.constant 0 : index
    %350 = vector.load %arg10[%c0_178, %c0_179] : memref<8x32xf32, #tpu.memory_space<vmem>>, vector<8x32xf32>
    %351 = tpu.concatenate %347, %350 in 1 : vector<8x32xf32>, vector<8x32xf32> -> vector<8x64xf32>
    %cst_180 = arith.constant dense<0.000000e+00> : vector<8x128xf32>
    %352 = tpu.matmul %351, %4, %cst_180 {dimension_numbers = #tpu.dot_dimension_numbers<[1], [0], [0], [1], [0, 0, 1, 1], [], []>} : vector<8x64xf32>, vector<64x128xf32>, vector<8x128xf32> -> vector<8x128xf32>
    %353 = vector.broadcast %5 : vector<1x128xf32> to vector<8x128xf32>
    %354 = arith.addf %352, %353 : vector<8x128xf32>
    %c0_181 = arith.constant 0 : index
    %c0_182 = arith.constant 0 : index
    %355 = vector.load %arg11[%c0_181, %c0_182] : memref<8x32xf32, #tpu.memory_space<vmem>>, vector<8x32xf32>
    %356 = arith.negf %354 : vector<8x128xf32>
    %357 = math.exp %356 : vector<8x128xf32>
    %cst_183 = arith.constant 1.000000e+00 : f32
    %358 = vector.broadcast %cst_183 : f32 to vector<8x128xf32>
    %359 = arith.addf %358, %357 : vector<8x128xf32>
    %360 = arith.divf %358, %359 : vector<8x128xf32>
    %361 = math.tanh %354 : vector<8x128xf32>
    %362 = vector.extract_strided_slice %360 {offsets = [0, 0], sizes = [8, 32], strides = [1, 1]} : vector<8x128xf32> to vector<8x32xf32>
    %363 = vector.extract_strided_slice %360 {offsets = [0, 32], sizes = [8, 32], strides = [1, 1]} : vector<8x128xf32> to vector<8x32xf32>
    %364 = vector.extract_strided_slice %361 {offsets = [0, 64], sizes = [8, 32], strides = [1, 1]} : vector<8x128xf32> to vector<8x32xf32>
    %365 = vector.extract_strided_slice %360 {offsets = [0, 96], sizes = [8, 32], strides = [1, 1]} : vector<8x128xf32> to vector<8x32xf32>
    %366 = arith.mulf %363, %355 : vector<8x32xf32>
    %367 = arith.mulf %362, %364 : vector<8x32xf32>
    %368 = arith.addf %366, %367 : vector<8x32xf32>
    %369 = math.tanh %368 : vector<8x32xf32>
    %370 = arith.mulf %365, %369 : vector<8x32xf32>
    %c0_184 = arith.constant 0 : index
    %c0_185 = arith.constant 0 : index
    %371 = vector.load %arg10[%c0_184, %c0_185] : memref<8x32xf32, #tpu.memory_space<vmem>>, vector<8x32xf32>
    tpu.vector_store %arg10[%c0_184, %c0_185], %370 {strides = array<i32>} : memref<8x32xf32, #tpu.memory_space<vmem>>, vector<8x32xf32>,
    %c0_186 = arith.constant 0 : index
    %c0_187 = arith.constant 0 : index
    %372 = vector.load %arg11[%c0_186, %c0_187] : memref<8x32xf32, #tpu.memory_space<vmem>>, vector<8x32xf32>
    tpu.vector_store %arg11[%c0_186, %c0_187], %368 {strides = array<i32>} : memref<8x32xf32, #tpu.memory_space<vmem>>, vector<8x32xf32>,
    %c56_188 = arith.constant 56 : index
    %c0_189 = arith.constant 0 : index
    %373 = vector.load %arg12[%c56_188, %c0_189] : memref<64x32xf32, #tpu.memory_space<vmem>>, vector<8x32xf32>
    tpu.vector_store %arg12[%c56_188, %c0_189], %370 {strides = array<i32>} : memref<64x32xf32, #tpu.memory_space<vmem>>, vector<8x32xf32>,
    %c0_190 = arith.constant 0 : index
    %c0_191 = arith.constant 0 : index
    %374 = vector.load %arg12[%c0_190, %c0_191] : memref<64x32xf32, #tpu.memory_space<vmem>>, vector<64x32xf32>
    %c0_192 = arith.constant 0 : index
    %c0_193 = arith.constant 0 : index
    %375 = vector.load %arg5[%c0_192, %c0_193] : memref<32x128xf32, #tpu.memory_space<vmem>>, vector<32x128xf32>
    %cst_194 = arith.constant dense<0.000000e+00> : vector<64x128xf32>
    %376 = tpu.matmul %374, %375, %cst_194 {dimension_numbers = #tpu.dot_dimension_numbers<[1], [0], [0], [1], [0, 0, 1, 1], [], []>} : vector<64x32xf32>, vector<32x128xf32>, vector<64x128xf32> -> vector<64x128xf32>
    %c0_195 = arith.constant 0 : index
    %c0_196 = arith.constant 0 : index
    %377 = vector.load %arg6[%c0_195, %c0_196] : memref<1x128xf32, #tpu.memory_space<vmem>>, vector<1x128xf32>
    %378 = vector.broadcast %377 : vector<1x128xf32> to vector<64x128xf32>
    %379 = arith.addf %376, %378 : vector<64x128xf32>
    %c0_197 = arith.constant 0 : index
    %c0_198 = arith.constant 0 : index
    %380 = vector.load %arg7[%c0_197, %c0_198] : memref<64x128xf32, #tpu.memory_space<vmem>>, vector<64x128xf32>
    tpu.vector_store %arg7[%c0_197, %c0_198], %379 {strides = array<i32>} : memref<64x128xf32, #tpu.memory_space<vmem>>, vector<64x128xf32>,
    return
  }
  func.func @transform_0(%arg0: i32) -> (i32, i32) {
    %c0_i32 = arith.constant 0 : i32
    %c0_i32_0 = arith.constant 0 : i32
    return %arg0, %c0_i32 : i32, i32
  }
  func.func @transform_1(%arg0: i32) -> (i32, i32) {
    %c0_i32 = arith.constant 0 : i32
    %c0_i32_0 = arith.constant 0 : i32
    %c0_i32_1 = arith.constant 0 : i32
    return %c0_i32, %c0_i32_0 : i32, i32
  }
  func.func @transform_2(%arg0: i32) -> (i32, i32) {
    %c0_i32 = arith.constant 0 : i32
    %c0_i32_0 = arith.constant 0 : i32
    %c0_i32_1 = arith.constant 0 : i32
    return %c0_i32, %c0_i32_0 : i32, i32
  }
  func.func @transform_3(%arg0: i32) -> (i32, i32) {
    %c0_i32 = arith.constant 0 : i32
    %c0_i32_0 = arith.constant 0 : i32
    %c0_i32_1 = arith.constant 0 : i32
    return %c0_i32, %c0_i32_0 : i32, i32
  }
  func.func @transform_4(%arg0: i32) -> (i32, i32) {
    %c0_i32 = arith.constant 0 : i32
    %c0_i32_0 = arith.constant 0 : i32
    %c0_i32_1 = arith.constant 0 : i32
    return %c0_i32, %c0_i32_0 : i32, i32
  }
  func.func @transform_5(%arg0: i32) -> (i32, i32) {
    %c0_i32 = arith.constant 0 : i32
    %c0_i32_0 = arith.constant 0 : i32
    %c0_i32_1 = arith.constant 0 : i32
    return %c0_i32, %c0_i32_0 : i32, i32
  }
  func.func @transform_6(%arg0: i32) -> (i32, i32) {
    %c0_i32 = arith.constant 0 : i32
    %c0_i32_0 = arith.constant 0 : i32
    return %arg0, %c0_i32 : i32, i32
  }
}

</mosaic_0001>

<bundles_post_ra>
// kernel: trump_lstm_forward.2
= control target key start
LH: loop header
LB: loop body
LE: loop exit
PB: predicated region body
PF: predicated region fallthrough
CT: control target
= control target key end

     0   :  { %vm28_vm0 = vcmask 130048   ;;  %s206_s1 = inlined_call_operand.vmem [shape: f32[16,128], index: 1, kind: input, shape index: {}]   ;;  %s207_s0 = inlined_call_operand.vmem [shape: f32[64,16], index: 0, kind: input, shape index: {}]   ;;  %s208_s2 = inlined_call_operand.vmem [shape: f32[1,128], index: 2, kind: input, shape index: {}]   ;;  %s209_s3 = inlined_call_operand.vmem [shape: f32[64,128], index: 3, kind: output, shape index: {}]  }
   0x1   :  { %v23_v0 = vld [vmem:[%s206_s1 + $0x8] sm:$0xff]  ;;  %v22_v1 = vld [vmem:[%s206_s1] sm:$0xff]  ;;  %v20_v3 = vld [vmem:[%s207_s0 + $0x30] sm:$0xff] }
   0x2   :  { %115 = vmatpush.msra.mxu2 %v23_v0  ;;  %116 = vmatpush.msra.mxu3 %v23_v0  ;;  %v18_v2 = vld [vmem:[%s207_s0 + $0x20] sm:$0xff]  ;;  %v16_v5 = vld [vmem:[%s207_s0 + $0x10] sm:$0xff]  ;;  %v19_v6 = vld [vmem:[%s207_s0 + $0x28] sm:$0xff] }
   0x3   :  { %67 = vmatpush.msra.mxu0 %v23_v0  ;;  %114 = vmatpush.msra.mxu1 %v23_v0  ;;  %v14_v4 = vld [vmem:[%s207_s0] sm:$0xff]  ;;  %v21_v7 = vld [vmem:[%s207_s0 + $0x38] sm:$0xff]  ;;  %v15_v8 = vld [vmem:[%s207_s0 + $0x8] sm:$0xff] }
   0x4   :  { %118 = vmatpush.msra.mxu2 %v22_v1  ;;  %119 = vmatpush.msra.mxu3 %v22_v1  ;;  %v17_v9 = vld [vmem:[%s207_s0 + $0x18] sm:$0xff]  ;;  %v120_v10 = vld [vmem:[%s208_s2] ss:$0 sm:$0xff] }
   0x5   :  { %110 = vmatmul.msk.f32.vlgmr.msra.gmra.mxu2 %vm28_vm0, %v18_v2  ;;  %112 = vmatmul.msk.f32.vlgmr.msra.gmra.mxu3 %vm28_vm0, %v20_v3 }
   0x6   :  { %68 = vmatpush.msra.mxu0 %v22_v1  ;;  %117 = vmatpush.msra.mxu1 %v22_v1 }
   0x7   :  { %106 = vmatmul.msk.f32.vlgmr.msra.gmra.mxu0 %vm28_vm0, %v14_v4  ;;  %108 = vmatmul.msk.f32.vlgmr.msra.gmra.mxu1 %vm28_vm0, %v16_v5 }
   0xd   :  { %111 = vmatmul.msk.f32.gmra.mxu2 %vm28_vm0, %v19_v6  ;;  %113 = vmatmul.msk.f32.gmra.mxu3 %vm28_vm0, %v21_v7 }
   0xf   :  { %107 = vmatmul.msk.f32.gmra.mxu0 %vm28_vm0, %v15_v8  ;;  %109 = vmatmul.msk.f32.gmra.mxu1 %vm28_vm0, %v17_v9 }
  0x84   :  { %v70_v11 = vpop.f32.mrf.mxu0  ;;  %v76_v12 = vpop.f32.mrf.mxu1 }
  0x85   :  { %v71_v13 = vadd.f32 %v120_v10, %v70_v11  ;;  %v77_v14 = vadd.f32 %v120_v10, %v76_v12 }
  0x87   :  { %94 = vst [vmem:[%s209_s3] sm:$0xff] %v71_v13 }
  0x88   :  { %96 = vst [vmem:[%s209_s3 + $0x10] sm:$0xff] %v77_v14  ;;  %v82_v15 = vpop.f32.mrf.mxu2  ;;  %v88_v16 = vpop.f32.mrf.mxu3 }
  0x89   :  { %v83_v17 = vadd.f32 %v120_v10, %v82_v15  ;;  %v89_v18 = vadd.f32 %v120_v10, %v88_v16 }
  0x8b   :  { %98 = vst [vmem:[%s209_s3 + $0x20] sm:$0xff] %v83_v17 }
  0x8c   :  { %100 = vst [vmem:[%s209_s3 + $0x30] sm:$0xff] %v89_v18  ;;  %v73_v19 = vpop.f32.mrf.mxu0  ;;  %v79_v20 = vpop.f32.mrf.mxu1 }
  0x8d   :  { %v74_v21 = vadd.f32 %v120_v10, %v73_v19  ;;  %v80_v22 = vadd.f32 %v120_v10, %v79_v20 }
  0x8f   :  { %95 = vst [vmem:[%s209_s3 + $0x8] sm:$0xff] %v74_v21 }
  0x90   :  { %97 = vst [vmem:[%s209_s3 + $0x18] sm:$0xff] %v80_v22  ;;  %v85_v23 = vpop.f32.mrf.mxu2  ;;  %v91_v24 = vpop.f32.mrf.mxu3 }
  0x91   :  { %v86_v25 = vadd.f32 %v120_v10, %v85_v23  ;;  %v92_v26 = vadd.f32 %v120_v10, %v91_v24 }
  0x93   :  { %99 = vst [vmem:[%s209_s3 + $0x28] sm:$0xff] %v86_v25 }
  0x94   :  { %101 = vst [vmem:[%s209_s3 + $0x38] sm:$0xff] %v92_v26 }

// kernel: trump_lstm_forward.3
= control target key start
LH: loop header
LB: loop body
LE: loop exit
PB: predicated region body
PF: predicated region fallthrough
CT: control target
= control target key end

     0   :  { %vm27_vm0 = vcmask 261120   ;;  %v1602_v2 = vmov 0.0   ;;  %s1604_s7 = smov 32   ;;  %s1605_s8 = smov 96   ;;  %vm133_vm5 = vcmask 523264   ;;  %s2079_s1 = inlined_call_operand.vmem [shape: f32[32,128], index: 1, kind: input, shape index: {}]   ;;  %s2080_s0 = inlined_call_operand.vmem [shape: f32[64,128], index: 0, kind: input, shape index: {}]   ;;  %s2081_s3 = inlined_call_operand.vmem [shape: f32[1,128], index: 3, kind: input, shape index: {}]   ;;  %s2082_s2 = inlined_call_operand.vmem [shape: f32[64,128], index: 2, kind: input, shape index: {}]   ;;  %s2083_s4 = inlined_call_operand.vmem [shape: f32[32,128], index: 4, kind: input, shape index: {}]   ;;  %s2084_s5 = inlined_call_operand.vmem [shape: f32[1,128], index: 5, kind: input, shape index: {}]   ;;  %s2085_s6 = inlined_call_operand.vmem [shape: f32[64,128], index: 6, kind: output, shape index: {}]  }
   0x1   :  { %v1644_v0 = vld [vmem:[%s2079_s1 + $0x18] sm:$0xff]  ;;  %v1649_v1 = vld [vmem:[%s2079_s1 + $0x10] sm:$0xff]  ;;  %28 = vst.msk [vmem:[#allocation2] sm:$0xff] %vm27_vm0, %v1602_v2  ;;  %v1658_v3 = vld [vmem:[%s2079_s1 + $0x8] sm:$0xff] }
   0x2   :  { %63 = vmatpush.msra.mxu0 %v1644_v0  ;;  %29 = vst.msk [vmem:[#allocation3] sm:$0xff] %vm27_vm0, %v1602_v2  ;;  %227 = vmatpush.msra.mxu2 %v1644_v0  ;;  %v1667_v4 = vld [vmem:[%s2079_s1] sm:$0xff]  ;;  %s1603_s1 = smov 64   ;;  %v1685_v31 = vld [vmem:[%s2082_s2 + $0x38] sm:$0xff]  ;;  %v1690_v32 = vld [vmem:[%s2082_s2 + $0x30] sm:$0xff] }
   0x3   :  { %30 = vst.msk [vmem:[#allocation4] sm:$0xff] %vm27_vm0, %v1602_v2  ;;  %v45_v6 = vld [vmem:[%s2080_s0] sm:$0xff]  ;;  %145 = vmatpush.msra.mxu1 %v1685_v31  ;;  %v1697_v33 = vld [vmem:[%s2082_s2 + $0x28] sm:$0xff]  ;;  %v1720_v41 = vld [vmem:[%s2082_s2 + $0x18] sm:$0xff] }
   0x4   :  { %64 = vmatpush.msra.mxu0 %v1649_v1  ;;  %31 = vst.msk [vmem:[#allocation5] sm:$0xff] %vm27_vm0, %v1602_v2  ;;  %228 = vmatpush.msra.mxu2 %v1649_v1  ;;  %v1714_v40 = vld [vmem:[%s2082_s2 + $0x20] sm:$0xff]  ;;  %v1726_v42 = vld [vmem:[%s2082_s2 + $0x10] sm:$0xff]  ;;  %v1734_v43 = vld [vmem:[%s2082_s2 + $0x8] sm:$0xff] }
   0x5   :  { %146 = vmatpush.msra.mxu1 %v1690_v32  ;;  %v1745_v44 = vld [vmem:[%s2082_s2] sm:$0xff]  ;;  %v210_v52 = vld [vmem:[%s2080_s0 + $0x8] sm:$0xff] }
   0x6   :  { %65 = vmatpush.msra.mxu0 %v1658_v3  ;;  %229 = vmatpush.msra.mxu2 %v1658_v3  ;;  %v1778_v49 = vld [vmem:[%s2081_s3] ss:$0 sm:$0xff] }
   0x7   :  { %147 = vmatpush.msra.mxu1 %v1697_v33 }
   0x8   :  { %66 = vmatpush.msra.mxu0 %v1667_v4  ;;  %v46_v5 = vld [vmem:[#allocation2] sm:$0xff]  ;;  %230 = vmatpush.msra.mxu2 %v1667_v4 }
   0x9   :  { %1423 = vmatmul.msk.f32.vlgmr.msra.gmra.mxu0 %vm27_vm0, %v46_v5  ;;  %v72_v10 = vld [vmem:[#allocation3] sm:$0xff]  ;;  %148 = vmatpush.msra.mxu1 %v1714_v40 }
   0xa   :  { %305 = vmatpush.msrb.mxu0 %v1685_v31  ;;  %465 = vmatpush.msrb.mxu2 %v1685_v31  ;;  %v124_v37 = vld [vmem:[#allocation4] sm:$0xff] }
   0xb   :  { %v157_v38 = vld [vmem:[#allocation5] sm:$0xff]  ;;  %149 = vmatpush.msra.mxu1 %v1720_v41 }
   0xc   :  { %306 = vmatpush.msrb.mxu0 %v1690_v32  ;;  %466 = vmatpush.msrb.mxu2 %v1690_v32 }
   0xd   :  { %150 = vmatpush.msra.mxu1 %v1726_v42 }
   0xe   :  { %307 = vmatpush.msrb.mxu0 %v1697_v33  ;;  %467 = vmatpush.msrb.mxu2 %v1697_v33 }
   0xf   :  { %151 = vmatpush.msra.mxu1 %v1734_v43 }
  0x10   :  { %308 = vmatpush.msrb.mxu0 %v1714_v40  ;;  %468 = vmatpush.msrb.mxu2 %v1714_v40 }
  0x11   :  { %152 = vmatpush.msra.mxu1 %v1745_v44 }
  0x12   :  { %309 = vmatpush.msrb.mxu0 %v1720_v41  ;;  %469 = vmatpush.msrb.mxu2 %v1720_v41 }
  0x13   :  { %625 = vmatpush.msrb.mxu1 %v1685_v31 }
  0x14   :  { %310 = vmatpush.msrb.mxu0 %v1726_v42  ;;  %470 = vmatpush.msrb.mxu2 %v1726_v42 }
  0x15   :  { %626 = vmatpush.msrb.mxu1 %v1690_v32 }
  0x16   :  { %311 = vmatpush.msrb.mxu0 %v1734_v43  ;;  %471 = vmatpush.msrb.mxu2 %v1734_v43 }
  0x17   :  { %627 = vmatpush.msrb.mxu1 %v1697_v33 }
  0x18   :  { %312 = vmatpush.msrb.mxu0 %v1745_v44  ;;  %472 = vmatpush.msrb.mxu2 %v1745_v44 }
  0x19   :  { %628 = vmatpush.msrb.mxu1 %v1714_v40 }
  0x1a   :  { %387 = vmatpush.msra.mxu0 %v1644_v0 }
  0x1b   :  { %629 = vmatpush.msrb.mxu1 %v1720_v41 }
  0x1c   :  { %388 = vmatpush.msra.mxu0 %v1649_v1 }
  0x1d   :  { %630 = vmatpush.msrb.mxu1 %v1726_v42 }
  0x1e   :  { %389 = vmatpush.msra.mxu0 %v1658_v3 }
  0x1f   :  { %631 = vmatpush.msrb.mxu1 %v1734_v43 }
  0x20   :  { %390 = vmatpush.msra.mxu0 %v1667_v4 }
  0x21   :  { %632 = vmatpush.msrb.mxu1 %v1745_v44 }
  0x86   :  { %v68_v7 = vpop.f32.mrf.mxu0 }
  0x87   :  { %v71_v8 = vadd.f32 %v68_v7, %v45_v6 }
  0x89   :  { %1469 = vtanh.f32 %v71_v8  ;;  %v1424_v11 = vmul.f32 -1.442695, %v71_v8 }
  0x8b   :  { %1471 = vpow2.f32 %v1424_v11 }
  0x8f   :  { %v1470_v9 = vpop.eup %1469 }
  0x90   :  { %99 = vrot.lane.b32.xlu0 %v1470_v9, %s1603_s1 }
  0x91   :  { %v1472_v12 = vpop.eup %1471 }
  0x92   :  { %v76_v13 = vadd.f32 1.0, %v1472_v12 }
  0x94   :  { %1473 = vrcp.f32 %v76_v13  ;;  %v88_v19 = vand.u32 2147483648, %v76_v13  ;;  %vm82_vm2 = vweird.f32 %v76_v13  ;;  %v86_v20 = vand.u32 2147483647, %v76_v13 }
  0x96   :  { %v89_v22 = vor.u32 1.1754944e-38, %v88_v19  ;;  %vm87_vm4 = vcmp.eq.f32.partialorder %v86_v20, 8.507059e+37 }
  0x98   :  { %94 = vrot.lane.b32.xlu0 %v72_v10, %s1604_s7 }
  0x9a   :  { %v1474_v14 = vpop.eup %1473 }
  0x9b   :  { %v78_v15 = vmul.f32 %v1474_v14, %v76_v13  ;;  %vm83_vm1 = vweird.f32 %v1474_v14 }
  0x9c   :  { %vm84_vm3 = vmor %vm82_vm2, %vm83_vm1 }
  0x9d   :  { %v79_v16 = vsub.f32 1.0, %v78_v15 }
  0x9f   :  { %v80_v17 = vmul.f32 %v1474_v14, %v79_v16 }
  0xa1   :  { %v81_v18 = vadd.f32 %v1474_v14, %v80_v17 }
  0xa3   :  { %v85_v21 = vsel %vm84_vm3, %v1474_v14, %v81_v18 }
  0xa4   :  { %v90_v24 = vsel %vm87_vm4, %v89_v22, %v85_v21 }
 0x102   :  { %v100_v23 = vpop.permute.xlu0 %99 }
 0x103   :  { %v102_v25 = vmul.f32 %v100_v23, %v90_v24 }
 0x105   :  { %104 = vrot.lane.b32.xlu1 %v102_v25, %s1604_s7 }
 0x10a   :  { %v95_v26 = vpop.permute.xlu0 %94 }
 0x10b   :  { %v97_v27 = vmul.f32 %v95_v26, %v90_v24 }
 0x177   :  { %v105_v28 = vpop.permute.xlu1 %104 }
 0x178   :  { %v107_v29 = vadd.f32 %v105_v28, %v97_v27 }
 0x17a   :  { %1475 = vtanh.f32 %v107_v29 }
 0x180   :  { %v1476_v30 = vpop.eup %1475 }
 0x181   :  { %110 = vrot.lane.b32.xlu1 %v1476_v30, %s1603_s1 }
 0x189   :  { %120 = vrot.lane.b32.xlu1 %v107_v29, %s1605_s8 }
 0x1f3   :  { %v111_v34 = vpop.permute.xlu1 %110 }
 0x1f4   :  { %v113_v35 = vmul.f32 %v111_v34, %v90_v24 }
 0x1f6   :  { %115 = vrot.lane.b32.xlu2 %v113_v35, %s1604_s7 }
 0x1fb   :  { %v121_v36 = vpop.permute.xlu1 %120 }
 0x1fc   :  { %123 = vst.msk [vmem:[#allocation3] sm:$0xff] %vm27_vm0, %v121_v36 }
 0x1fe   :  { %126 = vrot.lane.b32.xlu2 %v124_v37, %s1604_s7 }
 0x203   :  { %v236_v39 = vld [vmem:[#allocation3] sm:$0xff] }
 0x206   :  { %179 = vrot.lane.b32.xlu2 %v157_v38, %s1604_s7 }
 0x20e   :  { %258 = vrot.lane.b32.xlu2 %v236_v39, %s1604_s7 }
 0x250   :  { %v116_v45 = vpop.permute.xlu2 %115 }
 0x251   :  { %118 = vst.msk [vmem:[#allocation2] sm:$0xff] %vm27_vm0, %v116_v45 }
 0x258   :  { %v127_v46 = vpop.permute.xlu2 %126  ;;  %v211_v47 = vld [vmem:[#allocation2] sm:$0xff] }
 0x259   :  { %1427 = vmatmul.msk.f32.vlgmr.msra.gmra.mxu2 %vm27_vm0, %v211_v47  ;;  %v129_v48 = vsel %vm27_vm0, %v116_v45, %v127_v46 }
 0x25a   :  { %1425 = vmatmul.msk.f32.vlgmr.msra.gmra.mxu1 %vm133_vm5, %v129_v48  ;;  %867 = vmatpush.msra.mxu2 %v1644_v0 }
 0x25b   :  { %707 = vmatpush.msra.mxu1 %v1644_v0 }
 0x25c   :  { %868 = vmatpush.msra.mxu2 %v1649_v1 }
 0x25d   :  { %708 = vmatpush.msra.mxu1 %v1649_v1 }
 0x25e   :  { %869 = vmatpush.msra.mxu2 %v1658_v3 }
 0x25f   :  { %709 = vmatpush.msra.mxu1 %v1658_v3 }
 0x260   :  { %870 = vmatpush.msra.mxu2 %v1667_v4  ;;  %v180_v27 = vpop.permute.xlu2 %179 }
 0x261   :  { %710 = vmatpush.msra.mxu1 %v1667_v4 }
 0x268   :  { %v259_v34 = vpop.permute.xlu2 %258 }
 0x2d7   :  { %v154_v50 = vpop.f32.mrf.mxu1 }
 0x2d8   :  { %v155_v51 = vadd.f32 %v1778_v49, %v154_v50 }
 0x2da   :  { %1477 = vtanh.f32 %v155_v51  ;;  %v1426_v57 = vmul.f32 -1.442695, %v155_v51 }
 0x2dc   :  { %v232_v53 = vpop.f32.mrf.mxu2 }
 0x2dd   :  { %v235_v54 = vadd.f32 %v232_v53, %v210_v52  ;;  %v1341_v52 = vld [vmem:[%s2083_s4 + $0x18] sm:$0xff]  ;;  %v1340_v53 = vld [vmem:[%s2083_s4 + $0x10] sm:$0xff] }
 0x2de   :  { %1382 = vmatpush.msra.mxu3 %v1341_v52 }
 0x2df   :  { %1479 = vtanh.f32 %v235_v54  ;;  %v1428_v58 = vmul.f32 -1.442695, %v235_v54  ;;  %v1339_v54 = vld [vmem:[%s2083_s4 + $0x8] sm:$0xff] }
 0x2e0   :  { %v1478_v55 = vpop.eup %1477  ;;  %1481 = vpow2.f32 %v1426_v57  ;;  %1383 = vmatpush.msra.mxu3 %v1340_v53 }
 0x2e1   :  { %184 = vrot.lane.b32.xlu0 %v1478_v55, %s1603_s1  ;;  %1483 = vpow2.f32 %v1428_v58  ;;  %v1338_v55 = vld [vmem:[%s2083_s4] sm:$0xff] }
 0x2e2   :  { %1384 = vmatpush.msra.mxu3 %v1339_v54 }
 0x2e4   :  { %1385 = vmatpush.msra.mxu3 %v1338_v55 }
 0x2e5   :  { %v1480_v56 = vpop.eup %1479 }
 0x2e6   :  { %263 = vrot.lane.b32.xlu1 %v1480_v56, %s1603_s1  ;;  %v1482_v59 = vpop.eup %1481 }
 0x2e7   :  { %v161_v60 = vadd.f32 1.0, %v1482_v59  ;;  %v1484_v61 = vpop.eup %1483 }
 0x2e8   :  { %v240_v62 = vadd.f32 1.0, %v1484_v61 }
 0x2e9   :  { %1485 = vrcp.f32 %v161_v60  ;;  %v173_v11 = vand.u32 2147483648, %v161_v60  ;;  %vm167_vm7 = vweird.f32 %v161_v60  ;;  %v171_v12 = vand.u32 2147483647, %v161_v60 }
 0x2ea   :  { %1487 = vrcp.f32 %v240_v62  ;;  %v252_v20 = vand.u32 2147483648, %v240_v62  ;;  %vm246_vm11 = vweird.f32 %v240_v62  ;;  %v250_v21 = vand.u32 2147483647, %v240_v62 }
 0x2eb   :  { %v174_v15 = vor.u32 1.1754944e-38, %v173_v11  ;;  %vm172_vm9 = vcmp.eq.f32.partialorder %v171_v12, 8.507059e+37 }
 0x2ec   :  { %v253_v23 = vor.u32 1.1754944e-38, %v252_v20  ;;  %vm251_vm13 = vcmp.eq.f32.partialorder %v250_v21, 8.507059e+37 }
 0x2ef   :  { %v1486_v63 = vpop.eup %1485 }
 0x2f0   :  { %v163_v2 = vmul.f32 %v1486_v63, %v161_v60  ;;  %v1488_v6 = vpop.eup %1487  ;;  %vm168_vm6 = vweird.f32 %v1486_v63 }
 0x2f1   :  { %v242_v8 = vmul.f32 %v1488_v6, %v240_v62  ;;  %vm169_vm8 = vmor %vm167_vm7, %vm168_vm6  ;;  %vm247_vm10 = vweird.f32 %v1488_v6 }
 0x2f2   :  { %v164_v5 = vsub.f32 1.0, %v163_v2  ;;  %vm248_vm12 = vmor %vm246_vm11, %vm247_vm10 }
 0x2f3   :  { %v243_v10 = vsub.f32 1.0, %v242_v8 }
 0x2f4   :  { %v165_v7 = vmul.f32 %v1486_v63, %v164_v5  ;;  %v1833_v5 = vld [vmem:[%s2084_s5] ss:$0 sm:$0xff] }
 0x2f5   :  { %v244_v14 = vmul.f32 %v1488_v6, %v243_v10  ;;  %v370_v10 = vld [vmem:[%s2080_s0 + $0x10] sm:$0xff] }
 0x2f6   :  { %v166_v9 = vadd.f32 %v1486_v63, %v165_v7 }
 0x2f7   :  { %v245_v19 = vadd.f32 %v1488_v6, %v244_v14 }
 0x2f8   :  { %v170_v13 = vsel %vm169_vm8, %v1486_v63, %v166_v9 }
 0x2f9   :  { %v175_v17 = vsel %vm172_vm9, %v174_v15, %v170_v13  ;;  %v249_v22 = vsel %vm248_vm12, %v1488_v6, %v245_v19 }
 0x2fa   :  { %v254_v25 = vsel %vm251_vm13, %v253_v23, %v249_v22  ;;  %v182_v28 = vmul.f32 %v180_v27, %v175_v17 }
 0x2fb   :  { %v261_v35 = vmul.f32 %v259_v34, %v254_v25 }
 0x353   :  { %v185_v16 = vpop.permute.xlu0 %184 }
 0x354   :  { %v187_v18 = vmul.f32 %v185_v16, %v175_v17 }
 0x356   :  { %189 = vrot.lane.b32.xlu0 %v187_v18, %s1604_s7 }
 0x358   :  { %v264_v24 = vpop.permute.xlu1 %263 }
 0x359   :  { %v266_v26 = vmul.f32 %v264_v24, %v254_v25 }
 0x35e   :  { %268 = vrot.lane.b32.xlu0 %v266_v26, %s1604_s7 }
 0x3c8   :  { %v190_v29 = vpop.permute.xlu0 %189 }
 0x3c9   :  { %v192_v30 = vadd.f32 %v190_v29, %v182_v28 }
 0x3cb   :  { %1489 = vtanh.f32 %v192_v30 }
 0x3d0   :  { %v269_v36 = vpop.permute.xlu0 %268 }
 0x3d1   :  { %v1490_v37 = vpop.eup %1489  ;;  %v271_v38 = vadd.f32 %v269_v36, %v261_v35 }
 0x3d2   :  { %195 = vrot.lane.b32.xlu1 %v1490_v37, %s1603_s1 }
 0x3d3   :  { %1491 = vtanh.f32 %v271_v38 }
 0x3d9   :  { %v1492_v39 = vpop.eup %1491 }
 0x3da   :  { %274 = vrot.lane.b32.xlu0 %v1492_v39, %s1603_s1 }
 0x3e2   :  { %205 = vrot.lane.b32.xlu0 %v192_v30, %s1605_s8 }
 0x444   :  { %v196_v45 = vpop.permute.xlu1 %195 }
 0x445   :  { %v198_v46 = vmul.f32 %v196_v45, %v175_v17 }
 0x447   :  { %200 = vrot.lane.b32.xlu2 %v198_v46, %s1604_s7 }
 0x44c   :  { %v275_v47 = vpop.permute.xlu0 %274 }
 0x44d   :  { %v277_v48 = vmul.f32 %v275_v47, %v254_v25 }
 0x44f   :  { %279 = vrot.lane.b32.xlu1 %v277_v48, %s1604_s7 }
 0x454   :  { %v206_v50 = vpop.permute.xlu0 %205 }
 0x455   :  { %208 = vst.msk [vmem:[#allocation5] sm:$0xff] %vm27_vm0, %v206_v50 }
 0x45c   :  { %v317_v51 = vld [vmem:[#allocation5] sm:$0xff] }
 0x45d   :  { %339 = vrot.lane.b32.xlu0 %v317_v51, %s1604_s7 }
 0x4a1   :  { %v201_v56 = vpop.permute.xlu2 %200 }
 0x4a2   :  { %203 = vst.msk [vmem:[#allocation4] sm:$0xff] %vm27_vm0, %v201_v56 }
 0x4a3   :  { %209 = vst.msk [vmem:[#allocation6] sm:$0xff] %vm27_vm0, %v201_v56 }
 0x4a9   :  { %v288_v57 = vld [vmem:[#allocation4] sm:$0xff] }
 0x4aa   :  { %v1330_v58 = vld [vmem:[#allocation6] sm:$0xff]  ;;  %290 = vrot.lane.b32.xlu2 %v288_v57, %s1604_s7 }
 0x4ab   :  { %1455 = vmatmul.msk.f32.vlgmr.msra.gmra.mxu3 %vm27_vm0, %v1330_v58 }
 0x4b2   :  { %284 = vrot.lane.b32.xlu2 %v271_v38, %s1605_s8 }
 0x4c1   :  { %v280_v59 = vpop.permute.xlu1 %279 }
 0x4c2   :  { %282 = vst.msk [vmem:[#allocation2] sm:$0xff] %vm27_vm0, %v280_v59 }
 0x4c9   :  { %v371_v63 = vld [vmem:[#allocation2] sm:$0xff] }
 0x4cf   :  { %v340_v54 = vpop.permute.xlu0 %339 }
 0x504   :  { %v291_v60 = vpop.permute.xlu2 %290 }
 0x505   :  { %v293_v61 = vsel %vm27_vm0, %v280_v59, %v291_v60 }
 0x506   :  { %1429 = vmatmul.msk.f32.vlgmr.msrb.gmra.mxu0 %vm133_vm5, %v293_v61 }
 0x507   :  { %547 = vmatpush.msrb.mxu0 %v1644_v0 }
 0x509   :  { %548 = vmatpush.msrb.mxu0 %v1649_v1 }
 0x50b   :  { %549 = vmatpush.msrb.mxu0 %v1658_v3 }
 0x50c   :  { %v285_v62 = vpop.permute.xlu2 %284 }
 0x50d   :  { %287 = vst.msk [vmem:[#allocation3] sm:$0xff] %vm27_vm0, %v285_v62  ;;  %550 = vmatpush.msrb.mxu0 %v1667_v4 }
 0x50e   :  { %1431 = vmatmul.msk.f32.vlgmr.msra.gmra.mxu0 %vm27_vm0, %v371_v63 }
 0x50f   :  { %785 = vmatpush.msra.mxu0 %v1685_v31 }
 0x511   :  { %786 = vmatpush.msra.mxu0 %v1690_v32 }
 0x513   :  { %787 = vmatpush.msra.mxu0 %v1697_v33 }
 0x514   :  { %v396_v2 = vld [vmem:[#allocation3] sm:$0xff] }
 0x515   :  { %418 = vrot.lane.b32.xlu0 %v396_v2, %s1604_s7  ;;  %788 = vmatpush.msra.mxu0 %v1714_v40 }
 0x517   :  { %789 = vmatpush.msra.mxu0 %v1720_v41 }
 0x519   :  { %790 = vmatpush.msra.mxu0 %v1726_v42 }
 0x51b   :  { %791 = vmatpush.msra.mxu0 %v1734_v43 }
 0x51d   :  { %792 = vmatpush.msra.mxu0 %v1745_v44 }
 0x52e   :  { %v1387_v6 = vpop.f32.mrf.mxu3 }
 0x52f   :  { %v1388_v7 = vadd.f32 %v1833_v5, %v1387_v6 }
 0x531   :  { %1411 = vst [vmem:[%s2085_s6] sm:$0xff] %v1388_v7 }
 0x583   :  { %v314_v8 = vpop.f32.mrf.mxu0 }
 0x584   :  { %v315_v9 = vadd.f32 %v1778_v49, %v314_v8 }
 0x586   :  { %1493 = vtanh.f32 %v315_v9  ;;  %v1430_v15 = vmul.f32 -1.442695, %v315_v9 }
 0x587   :  { %v419_v58 = vpop.permute.xlu0 %418 }
 0x58b   :  { %v392_v11 = vpop.f32.mrf.mxu0 }
 0x58c   :  { %v1494_v12 = vpop.eup %1493  ;;  %v395_v13 = vadd.f32 %v392_v11, %v370_v10 }
 0x58d   :  { %344 = vrot.lane.b32.xlu1 %v1494_v12, %s1603_s1 }
 0x58e   :  { %1495 = vtanh.f32 %v395_v13  ;;  %v1432_v16 = vmul.f32 -1.442695, %v395_v13 }
 0x58f   :  { %1497 = vpow2.f32 %v1430_v15 }
 0x590   :  { %1499 = vpow2.f32 %v1432_v16 }
 0x594   :  { %v1496_v14 = vpop.eup %1495 }
 0x595   :  { %423 = vrot.lane.b32.xlu2 %v1496_v14, %s1603_s1  ;;  %v1498_v17 = vpop.eup %1497 }
 0x596   :  { %v321_v18 = vadd.f32 1.0, %v1498_v17  ;;  %v1500_v19 = vpop.eup %1499 }
 0x597   :  { %v400_v20 = vadd.f32 1.0, %v1500_v19 }
 0x598   :  { %1501 = vrcp.f32 %v321_v18  ;;  %v333_v29 = vand.u32 2147483648, %v321_v18  ;;  %vm327_vm15 = vweird.f32 %v321_v18  ;;  %v331_v30 = vand.u32 2147483647, %v321_v18 }
 0x599   :  { %1503 = vrcp.f32 %v400_v20  ;;  %v412_v46 = vand.u32 2147483648, %v400_v20  ;;  %vm406_vm4 = vweird.f32 %v400_v20  ;;  %v410_v47 = vand.u32 2147483647, %v400_v20 }
 0x59a   :  { %v334_v36 = vor.u32 1.1754944e-38, %v333_v29  ;;  %vm332_vm2 = vcmp.eq.f32.partialorder %v331_v30, 8.507059e+37 }
 0x59b   :  { %v413_v51 = vor.u32 1.1754944e-38, %v412_v46  ;;  %vm411_vm7 = vcmp.eq.f32.partialorder %v410_v47, 8.507059e+37 }
 0x59e   :  { %v1502_v21 = vpop.eup %1501 }
 0x59f   :  { %v323_v22 = vmul.f32 %v1502_v21, %v321_v18  ;;  %v1504_v24 = vpop.eup %1503  ;;  %vm328_vm14 = vweird.f32 %v1502_v21 }
 0x5a0   :  { %v402_v25 = vmul.f32 %v1504_v24, %v400_v20  ;;  %vm329_vm1 = vmor %vm327_vm15, %vm328_vm14  ;;  %vm407_vm3 = vweird.f32 %v1504_v24  ;;  %v530_v20 = vld [vmem:[%s2080_s0 + $0x18] sm:$0xff] }
 0x5a1   :  { %v324_v23 = vsub.f32 1.0, %v323_v22  ;;  %vm408_vm6 = vmor %vm406_vm4, %vm407_vm3 }
 0x5a2   :  { %v403_v27 = vsub.f32 1.0, %v402_v25 }
 0x5a3   :  { %v325_v26 = vmul.f32 %v1502_v21, %v324_v23 }
 0x5a4   :  { %v404_v34 = vmul.f32 %v1504_v24, %v403_v27 }
 0x5a5   :  { %v326_v28 = vadd.f32 %v1502_v21, %v325_v26 }
 0x5a6   :  { %v405_v39 = vadd.f32 %v1504_v24, %v404_v34 }
 0x5a7   :  { %v330_v35 = vsel %vm329_vm1, %v1502_v21, %v326_v28 }
 0x5a8   :  { %v335_v38 = vsel %vm332_vm2, %v334_v36, %v330_v35  ;;  %v409_v48 = vsel %vm408_vm6, %v1504_v24, %v405_v39 }
 0x5a9   :  { %v414_v52 = vsel %vm411_vm7, %v413_v51, %v409_v48  ;;  %v342_v55 = vmul.f32 %v340_v54, %v335_v38 }
 0x5aa   :  { %v421_v59 = vmul.f32 %v419_v58, %v414_v52 }
 0x5ef   :  { %v424_v50 = vpop.permute.xlu2 %423 }
 0x5f0   :  { %v426_v53 = vmul.f32 %v424_v50, %v414_v52 }
 0x5ff   :  { %v345_v37 = vpop.permute.xlu1 %344 }
 0x600   :  { %v347_v45 = vmul.f32 %v345_v37, %v335_v38 }
 0x602   :  { %349 = vrot.lane.b32.xlu1 %v347_v45, %s1604_s7 }
 0x60a   :  { %428 = vrot.lane.b32.xlu1 %v426_v53, %s1604_s7 }
 0x674   :  { %v350_v56 = vpop.permute.xlu1 %349 }
 0x675   :  { %v352_v57 = vadd.f32 %v350_v56, %v342_v55 }
 0x677   :  { %1505 = vtanh.f32 %v352_v57 }
 0x67c   :  { %v429_v60 = vpop.permute.xlu1 %428 }
 0x67d   :  { %v1506_v61 = vpop.eup %1505  ;;  %v431_v62 = vadd.f32 %v429_v60, %v421_v59 }
 0x67e   :  { %355 = vrot.lane.b32.xlu2 %v1506_v61, %s1603_s1 }
 0x67f   :  { %1507 = vtanh.f32 %v431_v62 }
 0x685   :  { %v1508_v63 = vpop.eup %1507 }
 0x686   :  { %434 = vrot.lane.b32.xlu1 %v1508_v63, %s1603_s1 }
 0x68e   :  { %365 = vrot.lane.b32.xlu1 %v352_v57, %s1605_s8 }
 0x6d8   :  { %v356_v2 = vpop.permute.xlu2 %355 }
 0x6d9   :  { %v358_v6 = vmul.f32 %v356_v2, %v335_v38 }
 0x6db   :  { %360 = vrot.lane.b32.xlu0 %v358_v6, %s1604_s7 }
 0x6f8   :  { %v435_v7 = vpop.permute.xlu1 %434 }
 0x6f9   :  { %v437_v8 = vmul.f32 %v435_v7, %v414_v52 }
 0x6fb   :  { %439 = vrot.lane.b32.xlu2 %v437_v8, %s1604_s7 }
 0x700   :  { %v366_v9 = vpop.permute.xlu1 %365 }
 0x701   :  { %368 = vst.msk [vmem:[#allocation5] sm:$0xff] %vm27_vm0, %v366_v9 }
 0x708   :  { %v477_v10 = vld [vmem:[#allocation5] sm:$0xff] }
 0x709   :  { %499 = vrot.lane.b32.xlu1 %v477_v10, %s1604_s7 }
 0x74d   :  { %v361_v11 = vpop.permute.xlu0 %360 }
 0x74e   :  { %363 = vst.msk [vmem:[#allocation4] sm:$0xff] %vm27_vm0, %v361_v11 }
 0x74f   :  { %369 = vst.msk [vmem:[#allocation6 + $0x8] sm:$0xff] %vm27_vm0, %v361_v11 }
 0x755   :  { %v440_v12 = vpop.permute.xlu2 %439  ;;  %v448_v13 = vld [vmem:[#allocation4] sm:$0xff] }
 0x756   :  { %442 = vst.msk [vmem:[#allocation2] sm:$0xff] %vm27_vm0, %v440_v12  ;;  %v1331_v14 = vld [vmem:[#allocation6 + $0x8] sm:$0xff]  ;;  %450 = vrot.lane.b32.xlu0 %v448_v13, %s1604_s7 }
 0x757   :  { %1456 = vmatmul.msk.f32.gmra.mxu3 %vm27_vm0, %v1331_v14 }
 0x75d   :  { %v531_v15 = vld [vmem:[#allocation2] sm:$0xff] }
 0x75e   :  { %444 = vrot.lane.b32.xlu0 %v431_v62, %s1605_s8  ;;  %1435 = vmatmul.msk.f32.vlgmr.msrb.gmra.mxu0 %vm27_vm0, %v531_v15 }
 0x75f   :  { %1187 = vmatpush.msrb.mxu0 %v1644_v0 }
 0x761   :  { %1188 = vmatpush.msrb.mxu0 %v1649_v1 }
 0x763   :  { %1189 = vmatpush.msrb.mxu0 %v1658_v3 }
 0x765   :  { %1190 = vmatpush.msrb.mxu0 %v1667_v4 }
 0x77b   :  { %v500_v9 = vpop.permute.xlu1 %499 }
 0x7c8   :  { %v451_v16 = vpop.permute.xlu0 %450 }
 0x7c9   :  { %v453_v17 = vsel %vm27_vm0, %v440_v12, %v451_v16 }
 0x7ca   :  { %1433 = vmatmul.msk.f32.vlgmr.msrb.gmra.mxu2 %vm133_vm5, %v453_v17 }
 0x7cb   :  { %945 = vmatpush.msrb.mxu2 %v1685_v31 }
 0x7cd   :  { %946 = vmatpush.msrb.mxu2 %v1690_v32 }
 0x7cf   :  { %947 = vmatpush.msrb.mxu2 %v1697_v33 }
 0x7d0   :  { %v445_v18 = vpop.permute.xlu0 %444 }
 0x7d1   :  { %447 = vst.msk [vmem:[#allocation3] sm:$0xff] %vm27_vm0, %v445_v18  ;;  %948 = vmatpush.msrb.mxu2 %v1714_v40 }
 0x7d3   :  { %949 = vmatpush.msrb.mxu2 %v1720_v41 }
 0x7d5   :  { %950 = vmatpush.msrb.mxu2 %v1726_v42 }
 0x7d7   :  { %951 = vmatpush.msrb.mxu2 %v1734_v43 }
 0x7d8   :  { %v556_v19 = vld [vmem:[#allocation3] sm:$0xff] }
 0x7d9   :  { %578 = vrot.lane.b32.xlu1 %v556_v19, %s1604_s7  ;;  %952 = vmatpush.msrb.mxu2 %v1745_v44 }
 0x7da   :  { %v1390_v21 = vpop.f32.mrf.mxu3 }
 0x7db   :  { %v1391_v22 = vadd.f32 %v1833_v5, %v1390_v21  ;;  %v552_v23 = vpop.f32.mrf.mxu0 }
 0x7dc   :  { %v555_v24 = vadd.f32 %v552_v23, %v530_v20 }
 0x7dd   :  { %1412 = vst [vmem:[%s2085_s6 + $0x8] sm:$0xff] %v1391_v22 }
 0x7de   :  { %1509 = vtanh.f32 %v555_v24  ;;  %v1436_v30 = vmul.f32 -1.442695, %v555_v24 }
 0x7e4   :  { %v1510_v25 = vpop.eup %1509 }
 0x7e5   :  { %583 = vrot.lane.b32.xlu0 %v1510_v25, %s1603_s1 }
 0x84b   :  { %v579_v13 = vpop.permute.xlu1 %578 }
 0x84d   :  { %v474_v26 = vpop.f32.mrf.mxu2 }
 0x84e   :  { %v475_v27 = vadd.f32 %v1778_v49, %v474_v26 }
 0x850   :  { %1511 = vtanh.f32 %v475_v27  ;;  %v1434_v29 = vmul.f32 -1.442695, %v475_v27 }
 0x852   :  { %1513 = vpow2.f32 %v1434_v29 }
 0x853   :  { %1515 = vpow2.f32 %v1436_v30 }
 0x856   :  { %v1512_v28 = vpop.eup %1511 }
 0x857   :  { %504 = vrot.lane.b32.xlu2 %v1512_v28, %s1603_s1  ;;  %v584_v6 = vpop.permute.xlu0 %583 }
 0x858   :  { %v1514_v34 = vpop.eup %1513 }
 0x859   :  { %v481_v35 = vadd.f32 1.0, %v1514_v34  ;;  %v1516_v36 = vpop.eup %1515 }
 0x85a   :  { %v560_v37 = vadd.f32 1.0, %v1516_v36 }
 0x85b   :  { %1517 = vrcp.f32 %v481_v35  ;;  %v493_v52 = vand.u32 2147483648, %v481_v35  ;;  %vm487_vm9 = vweird.f32 %v481_v35  ;;  %v491_v53 = vand.u32 2147483647, %v481_v35 }
 0x85c   :  { %1519 = vrcp.f32 %v560_v37  ;;  %v572_v61 = vand.u32 2147483648, %v560_v37  ;;  %vm566_vm13 = vweird.f32 %v560_v37  ;;  %v570_v62 = vand.u32 2147483647, %v560_v37 }
 0x85d   :  { %v494_v56 = vor.u32 1.1754944e-38, %v493_v52  ;;  %vm492_vm11 = vcmp.eq.f32.partialorder %v491_v53, 8.507059e+37 }
 0x85e   :  { %v573_v2 = vor.u32 1.1754944e-38, %v572_v61  ;;  %vm571_vm15 = vcmp.eq.f32.partialorder %v570_v62, 8.507059e+37 }
 0x861   :  { %v1518_v38 = vpop.eup %1517 }
 0x862   :  { %v483_v39 = vmul.f32 %v1518_v38, %v481_v35  ;;  %v1520_v46 = vpop.eup %1519  ;;  %vm488_vm8 = vweird.f32 %v1518_v38 }
 0x863   :  { %v562_v47 = vmul.f32 %v1520_v46, %v560_v37  ;;  %vm489_vm10 = vmor %vm487_vm9, %vm488_vm8  ;;  %vm567_vm12 = vweird.f32 %v1520_v46 }
 0x864   :  { %v484_v45 = vsub.f32 1.0, %v483_v39  ;;  %vm568_vm14 = vmor %vm566_vm13, %vm567_vm12 }
 0x865   :  { %v563_v50 = vsub.f32 1.0, %v562_v47 }
 0x866   :  { %v485_v48 = vmul.f32 %v1518_v38, %v484_v45 }
 0x867   :  { %v564_v54 = vmul.f32 %v1520_v46, %v563_v50 }
 0x868   :  { %v486_v51 = vadd.f32 %v1518_v38, %v485_v48 }
 0x869   :  { %v565_v59 = vadd.f32 %v1520_v46, %v564_v54 }
 0x86a   :  { %v490_v55 = vsel %vm489_vm10, %v1518_v38, %v486_v51 }
 0x86b   :  { %v495_v58 = vsel %vm492_vm11, %v494_v56, %v490_v55  ;;  %v569_v63 = vsel %vm568_vm14, %v1520_v46, %v565_v59 }
 0x86c   :  { %v574_v7 = vsel %vm571_vm15, %v573_v2, %v569_v63  ;;  %v502_v10 = vmul.f32 %v500_v9, %v495_v58 }
 0x86d   :  { %v586_v8 = vmul.f32 %v584_v6, %v574_v7  ;;  %v581_v14 = vmul.f32 %v579_v13, %v574_v7 }
 0x8b1   :  { %v505_v57 = vpop.permute.xlu2 %504 }
 0x8b2   :  { %v507_v60 = vmul.f32 %v505_v57, %v495_v58 }
 0x8b4   :  { %509 = vrot.lane.b32.xlu2 %v507_v60, %s1604_s7 }
 0x8bc   :  { %588 = vrot.lane.b32.xlu2 %v586_v8, %s1604_s7 }
 0x90e   :  { %v510_v11 = vpop.permute.xlu2 %509 }
 0x90f   :  { %v512_v12 = vadd.f32 %v510_v11, %v502_v10 }
 0x911   :  { %1521 = vtanh.f32 %v512_v12 }
 0x916   :  { %v589_v15 = vpop.permute.xlu2 %588 }
 0x917   :  { %v1522_v16 = vpop.eup %1521  ;;  %v591_v17 = vadd.f32 %v589_v15, %v581_v14 }
 0x918   :  { %515 = vrot.lane.b32.xlu0 %v1522_v16, %s1603_s1 }
 0x919   :  { %1523 = vtanh.f32 %v591_v17 }
 0x91f   :  { %v1524_v18 = vpop.eup %1523 }
 0x920   :  { %594 = vrot.lane.b32.xlu2 %v1524_v18, %s1603_s1 }
 0x928   :  { %525 = vrot.lane.b32.xlu2 %v512_v12, %s1605_s8 }
 0x97a   :  { %v595_v19 = vpop.permute.xlu2 %594 }
 0x97b   :  { %v597_v20 = vmul.f32 %v595_v19, %v574_v7 }
 0x97d   :  { %599 = vrot.lane.b32.xlu0 %v597_v20, %s1604_s7 }
 0x982   :  { %v526_v21 = vpop.permute.xlu2 %525 }
 0x983   :  { %528 = vst.msk [vmem:[#allocation5] sm:$0xff] %vm27_vm0, %v526_v21 }
 0x98a   :  { %v516_v22 = vpop.permute.xlu0 %515  ;;  %v637_v23 = vld [vmem:[#allocation5] sm:$0xff] }
 0x98b   :  { %v518_v24 = vmul.f32 %v516_v22, %v495_v58  ;;  %659 = vrot.lane.b32.xlu2 %v637_v23, %s1604_s7 }
 0x98d   :  { %520 = vrot.lane.b32.xlu1 %v518_v24, %s1604_s7 }
 0x9e5   :  { %v660_v16 = vpop.permute.xlu2 %659 }
 0x9ef   :  { %v600_v25 = vpop.permute.xlu0 %599 }
 0x9f0   :  { %602 = vst.msk [vmem:[#allocation2] sm:$0xff] %vm27_vm0, %v600_v25 }
 0x9f7   :  { %v691_v35 = vld [vmem:[#allocation2] sm:$0xff] }
 0x9ff   :  { %v521_v26 = vpop.permute.xlu1 %520 }
 0xa00   :  { %523 = vst.msk [vmem:[#allocation4] sm:$0xff] %vm27_vm0, %v521_v26 }
 0xa01   :  { %529 = vst.msk [vmem:[#allocation6 + $0x10] sm:$0xff] %vm27_vm0, %v521_v26 }
 0xa07   :  { %v608_v27 = vld [vmem:[#allocation4] sm:$0xff] }
 0xa08   :  { %v1332_v28 = vld [vmem:[#allocation6 + $0x10] sm:$0xff]  ;;  %610 = vrot.lane.b32.xlu1 %v608_v27, %s1604_s7 }
 0xa09   :  { %1457 = vmatmul.msk.f32.gmra.mxu3 %vm27_vm0, %v1332_v28 }
 0xa10   :  { %604 = vrot.lane.b32.xlu1 %v591_v17, %s1605_s8 }
 0xa7a   :  { %v611_v29 = vpop.permute.xlu1 %610 }
 0xa7b   :  { %v613_v30 = vsel %vm27_vm0, %v600_v25, %v611_v29 }
 0xa7c   :  { %1437 = vmatmul.msk.f32.vlgmr.msrb.gmra.mxu1 %vm133_vm5, %v613_v30 }
 0xa7d   :  { %1027 = vmatpush.msrb.mxu1 %v1644_v0 }
 0xa7f   :  { %1028 = vmatpush.msrb.mxu1 %v1649_v1 }
 0xa81   :  { %1029 = vmatpush.msrb.mxu1 %v1658_v3 }
 0xa82   :  { %v605_v34 = vpop.permute.xlu1 %604 }
 0xa83   :  { %607 = vst.msk [vmem:[#allocation3] sm:$0xff] %vm27_vm0, %v605_v34  ;;  %1030 = vmatpush.msrb.mxu1 %v1667_v4 }
 0xa84   :  { %1439 = vmatmul.msk.f32.vlgmr.msra.gmra.mxu1 %vm27_vm0, %v691_v35 }
 0xa85   :  { %1265 = vmatpush.msra.mxu1 %v1685_v31  ;;  %v690_v31 = vld [vmem:[%s2080_s0 + $0x20] sm:$0xff] }
 0xa87   :  { %1266 = vmatpush.msra.mxu1 %v1690_v32 }
 0xa89   :  { %1267 = vmatpush.msra.mxu1 %v1697_v33 }
 0xa8a   :  { %v716_v36 = vld [vmem:[#allocation3] sm:$0xff] }
 0xa8b   :  { %738 = vrot.lane.b32.xlu2 %v716_v36, %s1604_s7  ;;  %1268 = vmatpush.msra.mxu1 %v1714_v40 }
 0xa8c   :  { %v1393_v0 = vpop.f32.mrf.mxu3 }
 0xa8d   :  { %v1394_v1 = vadd.f32 %v1833_v5, %v1393_v0  ;;  %1269 = vmatpush.msra.mxu1 %v1720_v41 }
 0xa8f   :  { %1413 = vst [vmem:[%s2085_s6 + $0x10] sm:$0xff] %v1394_v1  ;;  %1270 = vmatpush.msra.mxu1 %v1726_v42 }
 0xa91   :  { %1271 = vmatpush.msra.mxu1 %v1734_v43 }
 0xa93   :  { %1272 = vmatpush.msra.mxu1 %v1745_v44 }
 0xae5   :  { %v739_v20 = vpop.permute.xlu2 %738 }
 0xaf9   :  { %v634_v3 = vpop.f32.mrf.mxu1 }
 0xafa   :  { %v635_v4 = vadd.f32 %v1778_v49, %v634_v3 }
 0xafc   :  { %1525 = vtanh.f32 %v635_v4  ;;  %v1438_v39 = vmul.f32 -1.442695, %v635_v4  ;;  %v1597_v4 = vld [vmem:[%s2082_s2 + $0x38] sm:$0xff] }
 0xb01   :  { %v712_v32 = vpop.f32.mrf.mxu1 }
 0xb02   :  { %v1526_v33 = vpop.eup %1525  ;;  %v715_v37 = vadd.f32 %v712_v32, %v690_v31  ;;  %v1598_v31 = vld [vmem:[%s2082_s2 + $0x30] sm:$0xff]  ;;  %v1599_v32 = vld [vmem:[%s2082_s2 + $0x28] sm:$0xff] }
 0xb03   :  { %664 = vrot.lane.b32.xlu0 %v1526_v33, %s1603_s1 }
 0xb04   :  { %1527 = vtanh.f32 %v715_v37  ;;  %v1440_v45 = vmul.f32 -1.442695, %v715_v37 }
 0xb05   :  { %1529 = vpow2.f32 %v1438_v39 }
 0xb06   :  { %1531 = vpow2.f32 %v1440_v45 }
 0xb0a   :  { %v1528_v38 = vpop.eup %1527 }
 0xb0b   :  { %743 = vrot.lane.b32.xlu1 %v1528_v38, %s1603_s1  ;;  %v1530_v46 = vpop.eup %1529 }
 0xb0c   :  { %v641_v47 = vadd.f32 1.0, %v1530_v46  ;;  %v1532_v48 = vpop.eup %1531 }
 0xb0d   :  { %v720_v50 = vadd.f32 1.0, %v1532_v48 }
 0xb0e   :  { %1533 = vrcp.f32 %v641_v47  ;;  %v653_v59 = vand.u32 2147483648, %v641_v47  ;;  %vm647_vm2 = vweird.f32 %v641_v47  ;;  %v651_v60 = vand.u32 2147483647, %v641_v47 }
 0xb0f   :  { %1535 = vrcp.f32 %v720_v50  ;;  %v732_v9 = vand.u32 2147483648, %v720_v50  ;;  %vm726_vm7 = vweird.f32 %v720_v50  ;;  %v730_v10 = vand.u32 2147483647, %v720_v50 }
 0xb10   :  { %v654_v63 = vor.u32 1.1754944e-38, %v653_v59  ;;  %vm652_vm4 = vcmp.eq.f32.partialorder %v651_v60, 8.507059e+37 }
 0xb11   :  { %v733_v12 = vor.u32 1.1754944e-38, %v732_v9  ;;  %vm731_vm9 = vcmp.eq.f32.partialorder %v730_v10, 8.507059e+37 }
 0xb14   :  { %v1534_v51 = vpop.eup %1533 }
 0xb15   :  { %v643_v52 = vmul.f32 %v1534_v51, %v641_v47  ;;  %v1536_v54 = vpop.eup %1535  ;;  %vm648_vm1 = vweird.f32 %v1534_v51 }
 0xb16   :  { %v722_v56 = vmul.f32 %v1536_v54, %v720_v50  ;;  %vm649_vm3 = vmor %vm647_vm2, %vm648_vm1  ;;  %vm727_vm6 = vweird.f32 %v1536_v54 }
 0xb17   :  { %v644_v53 = vsub.f32 1.0, %v643_v52  ;;  %vm728_vm8 = vmor %vm726_vm7, %vm727_vm6 }
 0xb18   :  { %v723_v58 = vsub.f32 1.0, %v722_v56 }
 0xb19   :  { %v645_v55 = vmul.f32 %v1534_v51, %v644_v53 }
 0xb1a   :  { %v724_v62 = vmul.f32 %v1536_v54, %v723_v58 }
 0xb1b   :  { %v646_v57 = vadd.f32 %v1534_v51, %v645_v55 }
 0xb1c   :  { %v725_v8 = vadd.f32 %v1536_v54, %v724_v62 }
 0xb1d   :  { %v650_v61 = vsel %vm649_vm3, %v1534_v51, %v646_v57 }
 0xb1e   :  { %v655_v6 = vsel %vm652_vm4, %v654_v63, %v650_v61  ;;  %v729_v11 = vsel %vm728_vm8, %v1536_v54, %v725_v8 }
 0xb1f   :  { %v734_v13 = vsel %vm731_vm9, %v733_v12, %v729_v11  ;;  %v662_v17 = vmul.f32 %v660_v16, %v655_v6 }
 0xb20   :  { %v741_v21 = vmul.f32 %v739_v20, %v734_v13 }
 0xb75   :  { %v665_v2 = vpop.permute.xlu0 %664 }
 0xb76   :  { %v667_v7 = vmul.f32 %v665_v2, %v655_v6 }
 0xb78   :  { %669 = vrot.lane.b32.xlu0 %v667_v7, %s1604_s7 }
 0xb7d   :  { %v744_v14 = vpop.permute.xlu1 %743 }
 0xb7e   :  { %v746_v15 = vmul.f32 %v744_v14, %v734_v13 }
 0xb80   :  { %748 = vrot.lane.b32.xlu0 %v746_v15, %s1604_s7 }
 0xbea   :  { %v670_v18 = vpop.permute.xlu0 %669 }
 0xbeb   :  { %v672_v19 = vadd.f32 %v670_v18, %v662_v17 }
 0xbed   :  { %1537 = vtanh.f32 %v672_v19 }
 0xbf2   :  { %v749_v22 = vpop.permute.xlu0 %748 }
 0xbf3   :  { %v1538_v23 = vpop.eup %1537  ;;  %v751_v24 = vadd.f32 %v749_v22, %v741_v21 }
 0xbf4   :  { %675 = vrot.lane.b32.xlu1 %v1538_v23, %s1603_s1 }
 0xbf5   :  { %1539 = vtanh.f32 %v751_v24 }
 0xbfb   :  { %v1540_v25 = vpop.eup %1539 }
 0xbfc   :  { %754 = vrot.lane.b32.xlu0 %v1540_v25, %s1603_s1 }
 0xc04   :  { %685 = vrot.lane.b32.xlu0 %v672_v19, %s1605_s8 }
 0xc66   :  { %v676_v26 = vpop.permute.xlu1 %675 }
 0xc67   :  { %v678_v27 = vmul.f32 %v676_v26, %v655_v6 }
 0xc69   :  { %680 = vrot.lane.b32.xlu2 %v678_v27, %s1604_s7 }
 0xc6e   :  { %v755_v28 = vpop.permute.xlu0 %754 }
 0xc6f   :  { %v757_v29 = vmul.f32 %v755_v28, %v734_v13 }
 0xc71   :  { %759 = vrot.lane.b32.xlu1 %v757_v29, %s1604_s7 }
 0xc76   :  { %v686_v30 = vpop.permute.xlu0 %685 }
 0xc77   :  { %688 = vst.msk [vmem:[#allocation5] sm:$0xff] %vm27_vm0, %v686_v30 }
 0xc7e   :  { %v797_v34 = vld [vmem:[#allocation5] sm:$0xff] }
 0xc7f   :  { %819 = vrot.lane.b32.xlu0 %v797_v34, %s1604_s7 }
 0xcc3   :  { %v681_v35 = vpop.permute.xlu2 %680 }
 0xcc4   :  { %683 = vst.msk [vmem:[#allocation4] sm:$0xff] %vm27_vm0, %v681_v35 }
 0xcc5   :  { %689 = vst.msk [vmem:[#allocation6 + $0x18] sm:$0xff] %vm27_vm0, %v681_v35 }
 0xccb   :  { %v768_v36 = vld [vmem:[#allocation4] sm:$0xff] }
 0xccc   :  { %v1333_v0 = vld [vmem:[#allocation6 + $0x18] sm:$0xff]  ;;  %770 = vrot.lane.b32.xlu2 %v768_v36, %s1604_s7 }
 0xccd   :  { %1458 = vmatmul.msk.f32.gmra.mxu3 %vm27_vm0, %v1333_v0 }
 0xcd4   :  { %764 = vrot.lane.b32.xlu2 %v751_v24, %s1605_s8 }
 0xce3   :  { %v760_v1 = vpop.permute.xlu1 %759 }
 0xce4   :  { %762 = vst.msk [vmem:[#allocation2] sm:$0xff] %vm27_vm0, %v760_v1 }
 0xceb   :  { %v851_v3 = vld [vmem:[#allocation2] sm:$0xff] }
 0xcec   :  { %1443 = vmatmul.msk.f32.vlgmr.msra.gmra.mxu2 %vm27_vm0, %v851_v3 }
 0xced   :  { %1105 = vmatpush.msra.mxu2 %v1597_v4 }
 0xcef   :  { %1106 = vmatpush.msra.mxu2 %v1598_v31 }
 0xcf1   :  { %1107 = vmatpush.msra.mxu2 %v1599_v32  ;;  %v820_v20 = vpop.permute.xlu0 %819 }
 0xcf3   :  { %1108 = vmatpush.msra.mxu2 %v1714_v40 }
 0xcf5   :  { %1109 = vmatpush.msra.mxu2 %v1720_v41 }
 0xcf7   :  { %1110 = vmatpush.msra.mxu2 %v1726_v42  ;;  %v850_v42 = vld [vmem:[%s2080_s0 + $0x28] sm:$0xff] }
 0xcf9   :  { %1111 = vmatpush.msra.mxu2 %v1734_v43 }
 0xcfb   :  { %1112 = vmatpush.msra.mxu2 %v1745_v44 }
 0xd26   :  { %v771_v33 = vpop.permute.xlu2 %770 }
 0xd27   :  { %v773_v37 = vsel %vm27_vm0, %v760_v1, %v771_v33 }
 0xd28   :  { %1441 = vmatmul.msk.f32.vlgmr.msra.gmra.mxu0 %vm133_vm5, %v773_v37 }
 0xd2e   :  { %v765_v38 = vpop.permute.xlu2 %764 }
 0xd2f   :  { %767 = vst.msk [vmem:[#allocation3] sm:$0xff] %vm27_vm0, %v765_v38 }
 0xd36   :  { %v876_v39 = vld [vmem:[#allocation3] sm:$0xff] }
 0xd37   :  { %898 = vrot.lane.b32.xlu0 %v876_v39, %s1604_s7 }
 0xd50   :  { %v1396_v40 = vpop.f32.mrf.mxu3 }
 0xd51   :  { %v1397_v41 = vadd.f32 %v1833_v5, %v1396_v40 }
 0xd53   :  { %1414 = vst [vmem:[%s2085_s6 + $0x18] sm:$0xff] %v1397_v41  ;;  %v1010_v41 = vld [vmem:[%s2080_s0 + $0x30] sm:$0xff] }
 0xd6f   :  { %v872_v43 = vpop.f32.mrf.mxu2 }
 0xd70   :  { %v875_v44 = vadd.f32 %v872_v43, %v850_v42 }
 0xd72   :  { %1541 = vtanh.f32 %v875_v44  ;;  %v1444_v51 = vmul.f32 -1.442695, %v875_v44 }
 0xd78   :  { %v1542_v45 = vpop.eup %1541 }
 0xd79   :  { %903 = vrot.lane.b32.xlu2 %v1542_v45, %s1603_s1 }
 0xda5   :  { %v794_v46 = vpop.f32.mrf.mxu0 }
 0xda6   :  { %v795_v47 = vadd.f32 %v1778_v49, %v794_v46 }
 0xda8   :  { %1543 = vtanh.f32 %v795_v47  ;;  %v1442_v50 = vmul.f32 -1.442695, %v795_v47 }
 0xda9   :  { %v899_v24 = vpop.permute.xlu0 %898 }
 0xdaa   :  { %1545 = vpow2.f32 %v1442_v50 }
 0xdab   :  { %1547 = vpow2.f32 %v1444_v51 }
 0xdae   :  { %v1544_v48 = vpop.eup %1543 }
 0xdaf   :  { %824 = vrot.lane.b32.xlu1 %v1544_v48, %s1603_s1  ;;  %v2004_v48 = vld [vmem:[%s2081_s3] ss:$0 sm:$0xff] }
 0xdb0   :  { %v1546_v52 = vpop.eup %1545 }
 0xdb1   :  { %v801_v53 = vadd.f32 1.0, %v1546_v52  ;;  %v1548_v54 = vpop.eup %1547 }
 0xdb2   :  { %v880_v55 = vadd.f32 1.0, %v1548_v54 }
 0xdb3   :  { %1549 = vrcp.f32 %v801_v53  ;;  %v813_v63 = vand.u32 2147483648, %v801_v53  ;;  %vm807_vm11 = vweird.f32 %v801_v53  ;;  %v811_v2 = vand.u32 2147483647, %v801_v53 }
 0xdb4   :  { %1551 = vrcp.f32 %v880_v55  ;;  %v892_v13 = vand.u32 2147483648, %v880_v55  ;;  %vm886_vm15 = vweird.f32 %v880_v55  ;;  %v890_v14 = vand.u32 2147483647, %v880_v55 }
 0xdb5   :  { %v814_v8 = vor.u32 1.1754944e-38, %v813_v63  ;;  %vm812_vm13 = vcmp.eq.f32.partialorder %v811_v2, 8.507059e+37 }
 0xdb6   :  { %v893_v16 = vor.u32 1.1754944e-38, %v892_v13  ;;  %vm891_vm2 = vcmp.eq.f32.partialorder %v890_v14, 8.507059e+37 }
 0xdb9   :  { %v1550_v56 = vpop.eup %1549 }
 0xdba   :  { %v803_v57 = vmul.f32 %v1550_v56, %v801_v53  ;;  %v1552_v59 = vpop.eup %1551  ;;  %vm808_vm10 = vweird.f32 %v1550_v56 }
 0xdbb   :  { %v882_v60 = vmul.f32 %v1552_v59, %v880_v55  ;;  %vm809_vm12 = vmor %vm807_vm11, %vm808_vm10  ;;  %vm887_vm14 = vweird.f32 %v1552_v59 }
 0xdbc   :  { %v804_v58 = vsub.f32 1.0, %v803_v57  ;;  %vm888_vm1 = vmor %vm886_vm15, %vm887_vm14 }
 0xdbd   :  { %v883_v61 = vsub.f32 1.0, %v882_v60 }
 0xdbe   :  { %v805_v49 = vmul.f32 %v1550_v56, %v804_v58 }
 0xdbf   :  { %v884_v6 = vmul.f32 %v1552_v59, %v883_v61 }
 0xdc0   :  { %v806_v62 = vadd.f32 %v1550_v56, %v805_v49 }
 0xdc1   :  { %v885_v11 = vadd.f32 %v1552_v59, %v884_v6 }
 0xdc2   :  { %v810_v7 = vsel %vm809_vm12, %v1550_v56, %v806_v62 }
 0xdc3   :  { %v815_v10 = vsel %vm812_vm13, %v814_v8, %v810_v7  ;;  %v889_v15 = vsel %vm888_vm1, %v1552_v59, %v885_v11 }
 0xdc4   :  { %v894_v18 = vsel %vm891_vm2, %v893_v16, %v889_v15  ;;  %v822_v21 = vmul.f32 %v820_v20, %v815_v10 }
 0xdc5   :  { %v901_v25 = vmul.f32 %v899_v24, %v894_v18 }
 0xdd3   :  { %v904_v17 = vpop.permute.xlu2 %903 }
 0xdd4   :  { %v906_v19 = vmul.f32 %v904_v17, %v894_v18 }
 0xe21   :  { %v825_v9 = vpop.permute.xlu1 %824 }
 0xe22   :  { %v827_v12 = vmul.f32 %v825_v9, %v815_v10 }
 0xe24   :  { %829 = vrot.lane.b32.xlu1 %v827_v12, %s1604_s7 }
 0xe2c   :  { %908 = vrot.lane.b32.xlu1 %v906_v19, %s1604_s7 }
 0xe96   :  { %v830_v22 = vpop.permute.xlu1 %829 }
 0xe97   :  { %v832_v23 = vadd.f32 %v830_v22, %v822_v21 }
 0xe99   :  { %1553 = vtanh.f32 %v832_v23 }
 0xe9e   :  { %v909_v26 = vpop.permute.xlu1 %908 }
 0xe9f   :  { %v1554_v27 = vpop.eup %1553  ;;  %v911_v28 = vadd.f32 %v909_v26, %v901_v25 }
 0xea0   :  { %835 = vrot.lane.b32.xlu2 %v1554_v27, %s1603_s1 }
 0xea1   :  { %1555 = vtanh.f32 %v911_v28 }
 0xea7   :  { %v1556_v29 = vpop.eup %1555 }
 0xea8   :  { %914 = vrot.lane.b32.xlu1 %v1556_v29, %s1603_s1 }
 0xeb0   :  { %845 = vrot.lane.b32.xlu1 %v832_v23, %s1605_s8 }
 0xefa   :  { %v836_v30 = vpop.permute.xlu2 %835 }
 0xefb   :  { %v838_v34 = vmul.f32 %v836_v30, %v815_v10 }
 0xefd   :  { %840 = vrot.lane.b32.xlu0 %v838_v34, %s1604_s7 }
 0xf1a   :  { %v915_v35 = vpop.permute.xlu1 %914 }
 0xf1b   :  { %v917_v36 = vmul.f32 %v915_v35, %v894_v18 }
 0xf1d   :  { %919 = vrot.lane.b32.xlu2 %v917_v36, %s1604_s7 }
 0xf22   :  { %v846_v0 = vpop.permute.xlu1 %845 }
 0xf23   :  { %848 = vst.msk [vmem:[#allocation5] sm:$0xff] %vm27_vm0, %v846_v0 }
 0xf2a   :  { %v957_v1 = vld [vmem:[#allocation5] sm:$0xff] }
 0xf2b   :  { %979 = vrot.lane.b32.xlu1 %v957_v1, %s1604_s7 }
 0xf6f   :  { %v841_v3 = vpop.permute.xlu0 %840 }
 0xf70   :  { %843 = vst.msk [vmem:[#allocation4] sm:$0xff] %vm27_vm0, %v841_v3 }
 0xf71   :  { %849 = vst.msk [vmem:[#allocation6 + $0x20] sm:$0xff] %vm27_vm0, %v841_v3 }
 0xf77   :  { %v920_v4 = vpop.permute.xlu2 %919  ;;  %v928_v31 = vld [vmem:[#allocation4] sm:$0xff] }
 0xf78   :  { %922 = vst.msk [vmem:[#allocation2] sm:$0xff] %vm27_vm0, %v920_v4  ;;  %v1334_v32 = vld [vmem:[#allocation6 + $0x20] sm:$0xff]  ;;  %930 = vrot.lane.b32.xlu0 %v928_v31, %s1604_s7 }
 0xf79   :  { %1459 = vmatmul.msk.f32.gmra.mxu3 %vm27_vm0, %v1334_v32 }
 0xf7f   :  { %v1011_v33 = vld [vmem:[#allocation2] sm:$0xff] }
 0xf80   :  { %924 = vrot.lane.b32.xlu0 %v911_v28, %s1605_s8  ;;  %1447 = vmatmul.msk.f32.vlgmr.msrb.gmra.mxu1 %vm27_vm0, %v1011_v33 }
 0xf9d   :  { %v980_v21 = vpop.permute.xlu1 %979 }
 0xfea   :  { %v931_v37 = vpop.permute.xlu0 %930 }
 0xfeb   :  { %v933_v38 = vsel %vm27_vm0, %v920_v4, %v931_v37 }
 0xfec   :  { %1445 = vmatmul.msk.f32.vlgmr.msrb.gmra.mxu2 %vm133_vm5, %v933_v38  ;;  %v1170_v38 = vld [vmem:[%s2080_s0 + $0x38] sm:$0xff] }
 0xff2   :  { %v925_v39 = vpop.permute.xlu0 %924 }
 0xff3   :  { %927 = vst.msk [vmem:[#allocation3] sm:$0xff] %vm27_vm0, %v925_v39 }
 0xffa   :  { %v1036_v40 = vld [vmem:[#allocation3] sm:$0xff] }
 0xffb   :  { %1058 = vrot.lane.b32.xlu1 %v1036_v40, %s1604_s7 }
 0xffc   :  { %v1399_v42 = vpop.f32.mrf.mxu3 }
 0xffd   :  { %v1400_v43 = vadd.f32 %v1833_v5, %v1399_v42  ;;  %v1032_v44 = vpop.f32.mrf.mxu1 }
 0xffe   :  { %v1035_v45 = vadd.f32 %v1032_v44, %v1010_v41 }
 0xfff   :  { %1415 = vst [vmem:[%s2085_s6 + $0x20] sm:$0xff] %v1400_v43 }
0x1000   :  { %1557 = vtanh.f32 %v1035_v45  ;;  %v1448_v52 = vmul.f32 -1.442695, %v1035_v45 }
0x1006   :  { %v1558_v46 = vpop.eup %1557 }
0x1007   :  { %1063 = vrot.lane.b32.xlu0 %v1558_v46, %s1603_s1 }
0x106d   :  { %v1059_v25 = vpop.permute.xlu1 %1058 }
0x106f   :  { %v954_v47 = vpop.f32.mrf.mxu2 }
0x1070   :  { %v955_v50 = vadd.f32 %v2004_v48, %v954_v47  ;;  %v2035_v47 = vld [vmem:[%s2084_s5] ss:$0 sm:$0xff] }
0x1072   :  { %1559 = vtanh.f32 %v955_v50  ;;  %v1446_v51 = vmul.f32 -1.442695, %v955_v50 }
0x1074   :  { %1561 = vpow2.f32 %v1446_v51 }
0x1075   :  { %1563 = vpow2.f32 %v1448_v52 }
0x1078   :  { %v1560_v5 = vpop.eup %1559 }
0x1079   :  { %984 = vrot.lane.b32.xlu2 %v1560_v5, %s1603_s1  ;;  %v1064_v18 = vpop.permute.xlu0 %1063 }
0x107a   :  { %v1562_v53 = vpop.eup %1561 }
0x107b   :  { %v961_v54 = vadd.f32 1.0, %v1562_v53  ;;  %v1564_v55 = vpop.eup %1563 }
0x107c   :  { %v1040_v56 = vadd.f32 1.0, %v1564_v55 }
0x107d   :  { %1565 = vrcp.f32 %v961_v54  ;;  %v973_v2 = vand.u32 2147483648, %v961_v54  ;;  %vm967_vm4 = vweird.f32 %v961_v54  ;;  %v971_v6 = vand.u32 2147483647, %v961_v54 }
0x107e   :  { %1567 = vrcp.f32 %v1040_v56  ;;  %v1052_v14 = vand.u32 2147483648, %v1040_v56  ;;  %vm1046_vm9 = vweird.f32 %v1040_v56  ;;  %v1050_v15 = vand.u32 2147483647, %v1040_v56 }
0x107f   :  { %v974_v9 = vor.u32 1.1754944e-38, %v973_v2  ;;  %vm972_vm7 = vcmp.eq.f32.partialorder %v971_v6, 8.507059e+37 }
0x1080   :  { %v1053_v17 = vor.u32 1.1754944e-38, %v1052_v14  ;;  %vm1051_vm11 = vcmp.eq.f32.partialorder %v1050_v15, 8.507059e+37 }
0x1083   :  { %v1566_v57 = vpop.eup %1565 }
0x1084   :  { %v963_v58 = vmul.f32 %v1566_v57, %v961_v54  ;;  %v1568_v60 = vpop.eup %1567  ;;  %vm968_vm3 = vweird.f32 %v1566_v57 }
0x1085   :  { %v1042_v49 = vmul.f32 %v1568_v60, %v1040_v56  ;;  %vm969_vm6 = vmor %vm967_vm4, %vm968_vm3  ;;  %vm1047_vm8 = vweird.f32 %v1568_v60 }
0x1086   :  { %v964_v59 = vsub.f32 1.0, %v963_v58  ;;  %vm1048_vm10 = vmor %vm1046_vm9, %vm1047_vm8 }
0x1087   :  { %v1043_v62 = vsub.f32 1.0, %v1042_v49 }
0x1088   :  { %v965_v61 = vmul.f32 %v1566_v57, %v964_v59 }
0x1089   :  { %v1044_v7 = vmul.f32 %v1568_v60, %v1043_v62 }
0x108a   :  { %v966_v63 = vadd.f32 %v1566_v57, %v965_v61 }
0x108b   :  { %v1045_v12 = vadd.f32 %v1568_v60, %v1044_v7 }
0x108c   :  { %v970_v8 = vsel %vm969_vm6, %v1566_v57, %v966_v63 }
0x108d   :  { %v975_v11 = vsel %vm972_vm7, %v974_v9, %v970_v8  ;;  %v1049_v16 = vsel %vm1048_vm10, %v1568_v60, %v1045_v12 }
0x108e   :  { %v1054_v19 = vsel %vm1051_vm11, %v1053_v17, %v1049_v16  ;;  %v982_v22 = vmul.f32 %v980_v21, %v975_v11 }
0x108f   :  { %v1066_v20 = vmul.f32 %v1064_v18, %v1054_v19  ;;  %v1061_v26 = vmul.f32 %v1059_v25, %v1054_v19 }
0x10d3   :  { %v985_v10 = vpop.permute.xlu2 %984 }
0x10d4   :  { %v987_v13 = vmul.f32 %v985_v10, %v975_v11 }
0x10d6   :  { %989 = vrot.lane.b32.xlu2 %v987_v13, %s1604_s7 }
0x10de   :  { %1068 = vrot.lane.b32.xlu2 %v1066_v20, %s1604_s7 }
0x1130   :  { %v990_v23 = vpop.permute.xlu2 %989 }
0x1131   :  { %v992_v24 = vadd.f32 %v990_v23, %v982_v22 }
0x1133   :  { %1569 = vtanh.f32 %v992_v24 }
0x1138   :  { %v1069_v27 = vpop.permute.xlu2 %1068 }
0x1139   :  { %v1570_v28 = vpop.eup %1569  ;;  %v1071_v29 = vadd.f32 %v1069_v27, %v1061_v26 }
0x113a   :  { %995 = vrot.lane.b32.xlu0 %v1570_v28, %s1603_s1 }
0x113b   :  { %1571 = vtanh.f32 %v1071_v29 }
0x1141   :  { %v1572_v30 = vpop.eup %1571 }
0x1142   :  { %1074 = vrot.lane.b32.xlu2 %v1572_v30, %s1603_s1 }
0x114a   :  { %1005 = vrot.lane.b32.xlu2 %v992_v24, %s1605_s8 }
0x119c   :  { %v1075_v34 = vpop.permute.xlu2 %1074 }
0x119d   :  { %v1077_v35 = vmul.f32 %v1075_v34, %v1054_v19 }
0x119f   :  { %1079 = vrot.lane.b32.xlu0 %v1077_v35, %s1604_s7 }
0x11a4   :  { %v1006_v36 = vpop.permute.xlu2 %1005 }
0x11a5   :  { %1008 = vst.msk [vmem:[#allocation5] sm:$0xff] %vm27_vm0, %v1006_v36 }
0x11ac   :  { %v996_v0 = vpop.permute.xlu0 %995  ;;  %v1117_v1 = vld [vmem:[#allocation5] sm:$0xff] }
0x11ad   :  { %v998_v3 = vmul.f32 %v996_v0, %v975_v11  ;;  %1139 = vrot.lane.b32.xlu2 %v1117_v1, %s1604_s7 }
0x11af   :  { %1000 = vrot.lane.b32.xlu1 %v998_v3, %s1604_s7 }
0x1207   :  { %v1140_v23 = vpop.permute.xlu2 %1139 }
0x1211   :  { %v1080_v4 = vpop.permute.xlu0 %1079 }
0x1212   :  { %1082 = vst.msk [vmem:[#allocation2] sm:$0xff] %vm27_vm0, %v1080_v4 }
0x1219   :  { %v1171_v31 = vld [vmem:[#allocation2] sm:$0xff] }
0x121a   :  { %1451 = vmatmul.msk.f32.vlgmr.msrb.gmra.mxu0 %vm27_vm0, %v1171_v31 }
0x1221   :  { %v1001_v32 = vpop.permute.xlu1 %1000 }
0x1222   :  { %1003 = vst.msk [vmem:[#allocation4] sm:$0xff] %vm27_vm0, %v1001_v32 }
0x1223   :  { %1009 = vst.msk [vmem:[#allocation6 + $0x28] sm:$0xff] %vm27_vm0, %v1001_v32 }
0x1229   :  { %v1088_v33 = vld [vmem:[#allocation4] sm:$0xff] }
0x122a   :  { %v1335_v37 = vld [vmem:[#allocation6 + $0x28] sm:$0xff]  ;;  %1090 = vrot.lane.b32.xlu1 %v1088_v33, %s1604_s7 }
0x122b   :  { %1460 = vmatmul.msk.f32.gmra.mxu3 %vm27_vm0, %v1335_v37 }
0x1232   :  { %1084 = vrot.lane.b32.xlu1 %v1071_v29, %s1605_s8 }
0x1297   :  { %v1192_v39 = vpop.f32.mrf.mxu0 }
0x1298   :  { %v1195_v40 = vadd.f32 %v1192_v39, %v1170_v38 }
0x129a   :  { %1573 = vtanh.f32 %v1195_v40  ;;  %v1452_v54 = vmul.f32 -1.442695, %v1195_v40 }
0x129c   :  { %v1091_v41 = vpop.permute.xlu1 %1090 }
0x129d   :  { %v1093_v42 = vsel %vm27_vm0, %v1080_v4, %v1091_v41 }
0x129e   :  { %1449 = vmatmul.msk.f32.vlgmr.msra.gmra.mxu2 %vm133_vm5, %v1093_v42 }
0x12a0   :  { %v1574_v43 = vpop.eup %1573 }
0x12a1   :  { %1223 = vrot.lane.b32.xlu1 %v1574_v43, %s1603_s1 }
0x12a4   :  { %v1085_v44 = vpop.permute.xlu1 %1084 }
0x12a5   :  { %1087 = vst.msk [vmem:[#allocation3] sm:$0xff] %vm27_vm0, %v1085_v44 }
0x12ac   :  { %v1196_v45 = vld [vmem:[#allocation3] sm:$0xff] }
0x12ad   :  { %1218 = vrot.lane.b32.xlu2 %v1196_v45, %s1604_s7 }
0x12ae   :  { %v1402_v46 = vpop.f32.mrf.mxu3 }
0x12af   :  { %v1403_v50 = vadd.f32 %v2035_v47, %v1402_v46 }
0x12b1   :  { %1416 = vst [vmem:[%s2085_s6 + $0x28] sm:$0xff] %v1403_v50 }
0x1307   :  { %v1219_v27 = vpop.permute.xlu2 %1218 }
0x1313   :  { %v1224_v20 = vpop.permute.xlu1 %1223 }
0x1321   :  { %v1114_v5 = vpop.f32.mrf.mxu2 }
0x1322   :  { %v1115_v51 = vadd.f32 %v2004_v48, %v1114_v5 }
0x1324   :  { %1575 = vtanh.f32 %v1115_v51  ;;  %v1450_v53 = vmul.f32 -1.442695, %v1115_v51 }
0x1326   :  { %1577 = vpow2.f32 %v1450_v53 }
0x1327   :  { %1579 = vpow2.f32 %v1452_v54 }
0x132a   :  { %v1576_v52 = vpop.eup %1575 }
0x132b   :  { %1144 = vrot.lane.b32.xlu0 %v1576_v52, %s1603_s1 }
0x132c   :  { %v1578_v55 = vpop.eup %1577 }
0x132d   :  { %v1121_v56 = vadd.f32 1.0, %v1578_v55  ;;  %v1580_v57 = vpop.eup %1579 }
0x132e   :  { %v1200_v58 = vadd.f32 1.0, %v1580_v57 }
0x132f   :  { %1581 = vrcp.f32 %v1121_v56  ;;  %v1133_v7 = vand.u32 2147483648, %v1121_v56  ;;  %vm1127_vm13 = vweird.f32 %v1121_v56  ;;  %v1131_v8 = vand.u32 2147483647, %v1121_v56 }
0x1330   :  { %1583 = vrcp.f32 %v1200_v58  ;;  %v1212_v16 = vand.u32 2147483648, %v1200_v58  ;;  %vm1206_vm2 = vweird.f32 %v1200_v58  ;;  %v1210_v17 = vand.u32 2147483647, %v1200_v58 }
0x1331   :  { %v1134_v11 = vor.u32 1.1754944e-38, %v1133_v7  ;;  %vm1132_vm15 = vcmp.eq.f32.partialorder %v1131_v8, 8.507059e+37 }
0x1332   :  { %v1213_v19 = vor.u32 1.1754944e-38, %v1212_v16  ;;  %vm1211_vm4 = vcmp.eq.f32.partialorder %v1210_v17, 8.507059e+37 }
0x1335   :  { %v1582_v59 = vpop.eup %1581 }
0x1336   :  { %v1123_v60 = vmul.f32 %v1582_v59, %v1121_v56  ;;  %v1584_v61 = vpop.eup %1583  ;;  %vm1128_vm12 = vweird.f32 %v1582_v59 }
0x1337   :  { %v1202_v62 = vmul.f32 %v1584_v61, %v1200_v58  ;;  %vm1129_vm14 = vmor %vm1127_vm13, %vm1128_vm12  ;;  %vm1207_vm1 = vweird.f32 %v1584_v61 }
0x1338   :  { %v1124_v49 = vsub.f32 1.0, %v1123_v60  ;;  %vm1208_vm3 = vmor %vm1206_vm2, %vm1207_vm1 }
0x1339   :  { %v1203_v2 = vsub.f32 1.0, %v1202_v62 }
0x133a   :  { %v1125_v63 = vmul.f32 %v1582_v59, %v1124_v49 }
0x133b   :  { %v1204_v9 = vmul.f32 %v1584_v61, %v1203_v2 }
0x133c   :  { %v1126_v6 = vadd.f32 %v1582_v59, %v1125_v63 }
0x133d   :  { %v1205_v14 = vadd.f32 %v1584_v61, %v1204_v9 }
0x133e   :  { %v1130_v10 = vsel %vm1129_vm14, %v1582_v59, %v1126_v6 }
0x133f   :  { %v1135_v13 = vsel %vm1132_vm15, %v1134_v11, %v1130_v10  ;;  %v1209_v18 = vsel %vm1208_vm3, %v1584_v61, %v1205_v14 }
0x1340   :  { %v1214_v21 = vsel %vm1211_vm4, %v1213_v19, %v1209_v18  ;;  %v1142_v24 = vmul.f32 %v1140_v23, %v1135_v13 }
0x1341   :  { %v1226_v22 = vmul.f32 %v1224_v20, %v1214_v21  ;;  %v1221_v28 = vmul.f32 %v1219_v27, %v1214_v21 }
0x139d   :  { %v1145_v12 = vpop.permute.xlu0 %1144 }
0x139e   :  { %v1147_v15 = vmul.f32 %v1145_v12, %v1135_v13 }
0x13a0   :  { %1149 = vrot.lane.b32.xlu0 %v1147_v15, %s1604_s7 }
0x13a8   :  { %1228 = vrot.lane.b32.xlu0 %v1226_v22, %s1604_s7 }
0x1412   :  { %v1150_v25 = vpop.permute.xlu0 %1149 }
0x1413   :  { %v1152_v26 = vadd.f32 %v1150_v25, %v1142_v24 }
0x1415   :  { %1585 = vtanh.f32 %v1152_v26 }
0x141a   :  { %v1229_v29 = vpop.permute.xlu0 %1228 }
0x141b   :  { %v1586_v30 = vpop.eup %1585  ;;  %v1231_v34 = vadd.f32 %v1229_v29, %v1221_v28 }
0x141c   :  { %1155 = vrot.lane.b32.xlu1 %v1586_v30, %s1603_s1 }
0x141d   :  { %1587 = vtanh.f32 %v1231_v34 }
0x1423   :  { %v1588_v35 = vpop.eup %1587 }
0x1424   :  { %1234 = vrot.lane.b32.xlu0 %v1588_v35, %s1603_s1 }
0x142c   :  { %1165 = vrot.lane.b32.xlu0 %v1152_v26, %s1605_s8 }
0x148e   :  { %v1156_v36 = vpop.permute.xlu1 %1155 }
0x148f   :  { %v1158_v0 = vmul.f32 %v1156_v36, %v1135_v13 }
0x1491   :  { %1160 = vrot.lane.b32.xlu2 %v1158_v0, %s1604_s7 }
0x1496   :  { %v1235_v1 = vpop.permute.xlu0 %1234 }
0x1497   :  { %v1237_v3 = vmul.f32 %v1235_v1, %v1214_v21 }
0x1499   :  { %1239 = vrot.lane.b32.xlu1 %v1237_v3, %s1604_s7 }
0x149e   :  { %v1166_v4 = vpop.permute.xlu0 %1165 }
0x149f   :  { %1168 = vst.msk [vmem:[#allocation5] sm:$0xff] %vm27_vm0, %v1166_v4 }
0x14a6   :  { %v1277_v37 = vld [vmem:[#allocation5] sm:$0xff] }
0x14eb   :  { %v1161_v31 = vpop.permute.xlu2 %1160 }
0x14ec   :  { %1163 = vst.msk [vmem:[#allocation4] sm:$0xff] %vm27_vm0, %v1161_v31 }
0x14ed   :  { %1169 = vst.msk [vmem:[#allocation6 + $0x30] sm:$0xff] %vm27_vm0, %v1161_v31 }
0x14f3   :  { %v1248_v32 = vld [vmem:[#allocation4] sm:$0xff] }
0x14f4   :  { %v1336_v33 = vld [vmem:[#allocation6 + $0x30] sm:$0xff]  ;;  %1250 = vrot.lane.b32.xlu2 %v1248_v32, %s1604_s7 }
0x14f5   :  { %1461 = vmatmul.msk.f32.gmra.mxu3 %vm27_vm0, %v1336_v33 }
0x14fc   :  { %1299 = vrot.lane.b32.xlu2 %v1277_v37, %s1604_s7 }
0x150b   :  { %v1240_v38 = vpop.permute.xlu1 %1239 }
0x150c   :  { %1242 = vst.msk [vmem:[#allocation2] sm:$0xff] %vm27_vm0, %v1240_v38 }
0x154e   :  { %v1251_v39 = vpop.permute.xlu2 %1250 }
0x154f   :  { %v1253_v40 = vsel %vm27_vm0, %v1240_v38, %v1251_v39 }
0x1550   :  { %1453 = vmatmul.msk.f32.vlgmr.msra.gmra.mxu1 %vm133_vm5, %v1253_v40 }
0x1556   :  { %v1300_v61 = vpop.permute.xlu2 %1299 }
0x1578   :  { %v1405_v41 = vpop.f32.mrf.mxu3 }
0x1579   :  { %v1406_v42 = vadd.f32 %v2035_v47, %v1405_v41 }
0x157b   :  { %1417 = vst [vmem:[%s2085_s6 + $0x30] sm:$0xff] %v1406_v42 }
0x15cd   :  { %v1274_v43 = vpop.f32.mrf.mxu1 }
0x15ce   :  { %v1275_v44 = vadd.f32 %v2004_v48, %v1274_v43 }
0x15d0   :  { %1589 = vtanh.f32 %v1275_v44  ;;  %v1454_v46 = vmul.f32 -1.442695, %v1275_v44 }
0x15d2   :  { %1591 = vpow2.f32 %v1454_v46 }
0x15d6   :  { %v1590_v45 = vpop.eup %1589 }
0x15d7   :  { %1304 = vrot.lane.b32.xlu1 %v1590_v45, %s1603_s1 }
0x15d8   :  { %v1592_v50 = vpop.eup %1591 }
0x15d9   :  { %v1281_v5 = vadd.f32 1.0, %v1592_v50 }
0x15db   :  { %1593 = vrcp.f32 %v1281_v5  ;;  %v1293_v56 = vand.u32 2147483648, %v1281_v5  ;;  %vm1287_vm6 = vweird.f32 %v1281_v5  ;;  %v1291_v57 = vand.u32 2147483647, %v1281_v5 }
0x15dd   :  { %v1294_v58 = vor.u32 1.1754944e-38, %v1293_v56  ;;  %vm1292_vm8 = vcmp.eq.f32.partialorder %v1291_v57, 8.507059e+37 }
0x15e1   :  { %v1594_v51 = vpop.eup %1593 }
0x15e2   :  { %v1283_v52 = vmul.f32 %v1594_v51, %v1281_v5  ;;  %vm1288_vm5 = vweird.f32 %v1594_v51 }
0x15e3   :  { %vm1289_vm7 = vmor %vm1287_vm6, %vm1288_vm5 }
0x15e4   :  { %v1284_v53 = vsub.f32 1.0, %v1283_v52 }
0x15e6   :  { %v1285_v54 = vmul.f32 %v1594_v51, %v1284_v53 }
0x15e8   :  { %v1286_v55 = vadd.f32 %v1594_v51, %v1285_v54 }
0x15ea   :  { %v1290_v48 = vsel %vm1289_vm7, %v1594_v51, %v1286_v55 }
0x15eb   :  { %v1295_v60 = vsel %vm1292_vm8, %v1294_v58, %v1290_v48 }
0x15ec   :  { %v1302_v62 = vmul.f32 %v1300_v61, %v1295_v60 }
0x1649   :  { %v1305_v59 = vpop.permute.xlu1 %1304 }
0x164a   :  { %v1307_v49 = vmul.f32 %v1305_v59, %v1295_v60 }
0x164c   :  { %1309 = vrot.lane.b32.xlu0 %v1307_v49, %s1604_s7 }
0x1654   :  { %1244 = vrot.lane.b32.xlu0 %v1231_v34, %s1605_s8 }
0x16be   :  { %v1310_v63 = vpop.permute.xlu0 %1309 }
0x16bf   :  { %v1312_v2 = vadd.f32 %v1310_v63, %v1302_v62 }
0x16c1   :  { %1595 = vtanh.f32 %v1312_v2 }
0x16c6   :  { %v1245_v6 = vpop.permute.xlu0 %1244 }
0x16c7   :  { %v1596_v7 = vpop.eup %1595  ;;  %1247 = vst.msk [vmem:[#allocation3] sm:$0xff] %vm27_vm0, %v1245_v6 }
0x16c8   :  { %1315 = vrot.lane.b32.xlu1 %v1596_v7, %s1603_s1 }
0x16d0   :  { %1325 = vrot.lane.b32.xlu1 %v1312_v2, %s1605_s8 }
0x173a   :  { %v1316_v8 = vpop.permute.xlu1 %1315 }
0x173b   :  { %v1318_v9 = vmul.f32 %v1316_v8, %v1295_v60 }
0x173d   :  { %1320 = vrot.lane.b32.xlu2 %v1318_v9, %s1604_s7 }
0x1742   :  { %v1326_v10 = vpop.permute.xlu1 %1325 }
0x1743   :  { %1328 = vst.msk [vmem:[#allocation5] sm:$0xff] %vm27_vm0, %v1326_v10 }
0x1797   :  { %v1321_v11 = vpop.permute.xlu2 %1320 }
0x1798   :  { %1323 = vst.msk [vmem:[#allocation4] sm:$0xff] %vm27_vm0, %v1321_v11 }
0x1799   :  { %1329 = vst.msk [vmem:[#allocation6 + $0x38] sm:$0xff] %vm27_vm0, %v1321_v11 }
0x17a0   :  { %v1337_v12 = vld [vmem:[#allocation6 + $0x38] sm:$0xff] }
0x17a1   :  { %1462 = vmatmul.msk.f32.gmra.mxu3 %vm27_vm0, %v1337_v12 }
0x1824   :  { %v1408_v13 = vpop.f32.mrf.mxu3 }
0x1825   :  { %v1409_v14 = vadd.f32 %v2035_v47, %v1408_v13 }
0x1827   :  { %1418 = vst [vmem:[%s2085_s6 + $0x38] sm:$0xff] %v1409_v14 }

</bundles_post_ra>
